<compile_context>
chip_gen: v6e
topology: v6e:2x2x1
jax: 0.10.0
libtpu: 0.0.40
codegen_flags: <defaults>
</compile_context>

<pallas_src>
import jax
import jax.numpy as jnp
from jax.experimental import pallas as pl
from jax.experimental.pallas import tpu as pltpu


IN_DIM = 28 * 28 * 3      # 2352
H1, H2 = 256, 128
LATENT = 16
OUT_PAD = 128             # lane-dense padded output width
MAX_TB = 1024             # double-buffered f32 x tile ~19 MiB -> fits v7x 64 MiB VMEM


def _round_up(x, m):
    return (x + m - 1) // m * m


def encoder_kernel(x_ref, w1_ref, b1_ref, w2_ref, b2_ref, w3_ref, b3_ref, o_ref):
    # x_ref: (TB, IN_DIM) f32; w*: bf16; b*: f32; o_ref: (TB, OUT_PAD) bf16.
    x = x_ref[...].astype(jnp.bfloat16)                 # f32 -> bf16 in VMEM (VPU)

    h1 = jnp.dot(x, w1_ref[...], preferred_element_type=jnp.float32)
    h1 = jnp.maximum(h1 + b1_ref[...], 0.0).astype(jnp.bfloat16)   # f32 bias + ReLU

    h2 = jnp.dot(h1, w2_ref[...], preferred_element_type=jnp.float32)
    h2 = jnp.maximum(h2 + b2_ref[...], 0.0).astype(jnp.bfloat16)   # f32 bias + ReLU

    out = jnp.dot(h2, w3_ref[...], preferred_element_type=jnp.float32) + b3_ref[...]
    o_ref[...] = out.astype(o_ref.dtype)


def encoder_forward(x_nchw, params):
    """x_nchw: (B, 3, 28, 28) float32.  Returns (B, LATENT) float32."""
    B = x_nchw.shape[0]
    w1, b1, w2, b2, w3, b3 = params

    # nn.Flatten on an NCHW tensor: contiguous reshape (no copy).
    x_flat = x_nchw.reshape(B, IN_DIM)

    # Round batch up to the sublane granule only (<= 7 extra zero rows).
    B8 = _round_up(B, 8)
    if B8 != B:
        x_flat = jnp.pad(x_flat, ((0, B8 - B), (0, 0)))

    # Batch tile: large enough to amortize per-step overhead, small enough for
    # v7x VMEM, and >= 2 grid steps when possible (megacore on v7x).
    TB = min(MAX_TB, B8)
    if B8 >= 16 and B8 // TB < 2:
        TB = _round_up(-(-B8 // 2), 8)
    grid = (pl.cdiv(B8, TB),)

    # Weights as bf16 (w3/b3 lane-padded 16 -> 128); biases stay f32.
    w1_b = w1.astype(jnp.bfloat16)                                 # (2352, 256)
    w2_b = w2.astype(jnp.bfloat16)                                 # (256, 128)
    w3_b = jnp.zeros((H2, OUT_PAD), jnp.bfloat16).at[:, :LATENT].set(
        w3.astype(jnp.bfloat16))
    b1_f = b1.astype(jnp.float32).reshape(1, H1)
    b2_f = b2.astype(jnp.float32).reshape(1, H2)
    b3_f = jnp.zeros((1, OUT_PAD), jnp.float32).at[:, :LATENT].set(
        b3.astype(jnp.float32).reshape(1, LATENT))

    flops = 2 * B8 * (IN_DIM * H1 + H1 * H2 + H2 * OUT_PAD)
    bytes_accessed = (
        B8 * IN_DIM * 4                                    # x (f32, read once)
        + (IN_DIM * H1 + H1 * H2 + H2 * OUT_PAD) * 2       # weights (bf16)
        + (H1 + H2 + OUT_PAD) * 4                          # biases (f32)
        + B8 * OUT_PAD * 2                                 # output (bf16)
    )

    out_padded = pl.pallas_call(
        encoder_kernel,
        out_shape=jax.ShapeDtypeStruct((B8, OUT_PAD), jnp.bfloat16),
        grid_spec=pltpu.PrefetchScalarGridSpec(
            num_scalar_prefetch=0,
            grid=grid,
            in_specs=[
                pl.BlockSpec((TB, IN_DIM), lambda i: (i, 0)),     # x tile (streamed)
                pl.BlockSpec((IN_DIM, H1), lambda i: (0, 0)),     # w1 (resident)
                pl.BlockSpec((1, H1), lambda i: (0, 0)),          # b1
                pl.BlockSpec((H1, H2), lambda i: (0, 0)),         # w2
                pl.BlockSpec((1, H2), lambda i: (0, 0)),          # b2
                pl.BlockSpec((H2, OUT_PAD), lambda i: (0, 0)),    # w3 (lane-padded)
                pl.BlockSpec((1, OUT_PAD), lambda i: (0, 0)),     # b3 (lane-padded)
            ],
            out_specs=pl.BlockSpec((TB, OUT_PAD), lambda i: (i, 0)),
        ),
        compiler_params=pltpu.CompilerParams(
            dimension_semantics=("parallel",),
            vmem_limit_bytes=48 * 1024 * 1024,
        ),
        cost_estimate=pl.CostEstimate(
            flops=flops, transcendentals=0, bytes_accessed=bytes_accessed
        ),
    )(x_flat, w1_b, b1_f, w2_b, b2_f, w3_b, b3_f)

    # Drop the (tiny) batch rounding and the lane padding of the last layer.
    return out_padded[:B, :LATENT].astype(jnp.float32)


def init_params(key):
    """Deterministic init mirroring nn.Linear's default (uniform +/- 1/sqrt(fan_in))."""
    keys = jax.random.split(key, 6)

    def linear(kw, kb, fan_in, fan_out):
        bound = 1.0 / jnp.sqrt(fan_in)
        # Stored as (in_features, out_features) so the kernel does x @ W + b.
        w = jax.random.uniform(kw, (fan_in, fan_out), jnp.float32, -bound, bound)
        b = jax.random.uniform(kb, (1, fan_out), jnp.float32, -bound, bound)
        return w, b

    w1, b1 = linear(keys[0], keys[1], IN_DIM, H1)
    w2, b2 = linear(keys[2], keys[3], H1, H2)
    w3, b3 = linear(keys[4], keys[5], H2, LATENT)
    return (w1, b1, w2, b2, w3, b3)


def reference_forward(x_nchw, params):
    """Pure-JAX reference using the same bf16-operand / f32-accumulate recipe."""
    w1, b1, w2, b2, w3, b3 = params
    x = x_nchw.reshape(x_nchw.shape[0], -1)

    def bdot(a, w):
        return jnp.dot(a.astype(jnp.bfloat16).astype(jnp.float32),
                       w.astype(jnp.bfloat16).astype(jnp.float32))

    h1 = jnp.maximum(bdot(x, w1) + b1, 0.0)
    h2 = jnp.maximum(bdot(h1, w2) + b2, 0.0)
    return bdot(h2, w3) + b3


if __name__ == "__main__":
    key = jax.random.PRNGKey(0)
    kx, kp = jax.random.split(key)

    B = 2
    x = jax.random.normal(kx, (B, 3, 28, 28), jnp.float32)
    params = init_params(kp)

    out = jax.jit(encoder_forward)(x, params)
    out = jax.block_until_ready(out)

    ref = reference_forward(x, params)
    assert out.shape == (B, LATENT), out.shape
    assert jnp.allclose(out, ref, atol=1e-2, rtol=1e-2), "mismatch vs reference"

    print("KERNEL_OK")
</pallas_src>

<mosaic_0001>
module attributes {stable_mosaic.version = 11 : i64} {
  func.func @encoder_kernel(%arg0: i32, %arg1: memref<8x2352xf32, #tpu.memory_space<vmem>>, %arg2: memref<2352x256xbf16, #tpu.memory_space<vmem>>, %arg3: memref<1x256xf32, #tpu.memory_space<vmem>>, %arg4: memref<256x128xbf16, #tpu.memory_space<vmem>>, %arg5: memref<1x128xf32, #tpu.memory_space<vmem>>, %arg6: memref<128x128xbf16, #tpu.memory_space<vmem>>, %arg7: memref<1x128xf32, #tpu.memory_space<vmem>>, %arg8: memref<8x128xbf16, #tpu.memory_space<vmem>>) attributes {dimension_semantics = [#tpu.dimension_semantics<parallel>], iteration_bounds = array<i64: 1>, scalar_prefetch = 0 : i64, scratch_operands = 0 : i64, tpu.core_type = #tpu.core_type<tc>, window_params = [{transform_indices = @transform_0, window_bounds = array<i64: 8, 2352>}, {pipeline_mode = #tpu.pipeline_mode<synchronous>, transform_indices = @transform_1, window_bounds = array<i64: 2352, 256>}, {pipeline_mode = #tpu.pipeline_mode<synchronous>, transform_indices = @transform_2, window_bounds = array<i64: 1, 256>}, {pipeline_mode = #tpu.pipeline_mode<synchronous>, transform_indices = @transform_3, window_bounds = array<i64: 256, 128>}, {pipeline_mode = #tpu.pipeline_mode<synchronous>, transform_indices = @transform_4, window_bounds = array<i64: 1, 128>}, {pipeline_mode = #tpu.pipeline_mode<synchronous>, transform_indices = @transform_5, window_bounds = array<i64: 128, 128>}, {pipeline_mode = #tpu.pipeline_mode<synchronous>, transform_indices = @transform_6, window_bounds = array<i64: 1, 128>}, {transform_indices = @transform_7, window_bounds = array<i64: 8, 128>}]} {
    %c0 = arith.constant 0 : index
    %c0_0 = arith.constant 0 : index
    %0 = vector.load %arg1[%c0, %c0_0] : memref<8x2352xf32, #tpu.memory_space<vmem>>, vector<8x2352xf32>
    %1 = arith.truncf %0 : vector<8x2352xf32> to vector<8x2352xbf16>
    %c0_1 = arith.constant 0 : index
    %c0_2 = arith.constant 0 : index
    %2 = vector.load %arg2[%c0_1, %c0_2] : memref<2352x256xbf16, #tpu.memory_space<vmem>>, vector<2352x256xbf16>
    %cst = arith.constant dense<0.000000e+00> : vector<8x256xf32>
    %3 = tpu.matmul %1, %2, %cst {dimension_numbers = #tpu.dot_dimension_numbers<[1], [0], [0], [1], [0, 0, 1, 1], [], []>} : vector<8x2352xbf16>, vector<2352x256xbf16>, vector<8x256xf32> -> vector<8x256xf32>
    %c0_3 = arith.constant 0 : index
    %c0_4 = arith.constant 0 : index
    %4 = vector.load %arg3[%c0_3, %c0_4] : memref<1x256xf32, #tpu.memory_space<vmem>>, vector<1x256xf32>
    %5 = vector.broadcast %4 : vector<1x256xf32> to vector<8x256xf32>
    %6 = arith.addf %3, %5 : vector<8x256xf32>
    %cst_5 = arith.constant 0.000000e+00 : f32
    %7 = vector.broadcast %cst_5 : f32 to vector<8x256xf32>
    %8 = arith.maximumf %6, %7 : vector<8x256xf32>
    %9 = arith.truncf %8 : vector<8x256xf32> to vector<8x256xbf16>
    %c0_6 = arith.constant 0 : index
    %c0_7 = arith.constant 0 : index
    %10 = vector.load %arg4[%c0_6, %c0_7] : memref<256x128xbf16, #tpu.memory_space<vmem>>, vector<256x128xbf16>
    %cst_8 = arith.constant dense<0.000000e+00> : vector<8x128xf32>
    %11 = tpu.matmul %9, %10, %cst_8 {dimension_numbers = #tpu.dot_dimension_numbers<[1], [0], [0], [1], [0, 0, 1, 1], [], []>} : vector<8x256xbf16>, vector<256x128xbf16>, vector<8x128xf32> -> vector<8x128xf32>
    %c0_9 = arith.constant 0 : index
    %c0_10 = arith.constant 0 : index
    %12 = vector.load %arg5[%c0_9, %c0_10] : memref<1x128xf32, #tpu.memory_space<vmem>>, vector<1x128xf32>
    %13 = vector.broadcast %12 : vector<1x128xf32> to vector<8x128xf32>
    %14 = arith.addf %11, %13 : vector<8x128xf32>
    %cst_11 = arith.constant 0.000000e+00 : f32
    %15 = vector.broadcast %cst_11 : f32 to vector<8x128xf32>
    %16 = arith.maximumf %14, %15 : vector<8x128xf32>
    %17 = arith.truncf %16 : vector<8x128xf32> to vector<8x128xbf16>
    %c0_12 = arith.constant 0 : index
    %c0_13 = arith.constant 0 : index
    %18 = vector.load %arg6[%c0_12, %c0_13] : memref<128x128xbf16, #tpu.memory_space<vmem>>, vector<128x128xbf16>
    %cst_14 = arith.constant dense<0.000000e+00> : vector<8x128xf32>
    %19 = tpu.matmul %17, %18, %cst_14 {dimension_numbers = #tpu.dot_dimension_numbers<[1], [0], [0], [1], [0, 0, 1, 1], [], []>} : vector<8x128xbf16>, vector<128x128xbf16>, vector<8x128xf32> -> vector<8x128xf32>
    %c0_15 = arith.constant 0 : index
    %c0_16 = arith.constant 0 : index
    %20 = vector.load %arg7[%c0_15, %c0_16] : memref<1x128xf32, #tpu.memory_space<vmem>>, vector<1x128xf32>
    %21 = vector.broadcast %20 : vector<1x128xf32> to vector<8x128xf32>
    %22 = arith.addf %19, %21 : vector<8x128xf32>
    %23 = arith.truncf %22 : vector<8x128xf32> to vector<8x128xbf16>
    %c0_17 = arith.constant 0 : index
    %c0_18 = arith.constant 0 : index
    %24 = vector.load %arg8[%c0_17, %c0_18] : memref<8x128xbf16, #tpu.memory_space<vmem>>, vector<8x128xbf16>
    tpu.vector_store %arg8[%c0_17, %c0_18], %23 {strides = array<i32>} : memref<8x128xbf16, #tpu.memory_space<vmem>>, vector<8x128xbf16>,
    return
  }
  func.func @transform_0(%arg0: i32) -> (i32, i32) {
    %c0_i32 = arith.constant 0 : i32
    %c0_i32_0 = arith.constant 0 : i32
    return %arg0, %c0_i32 : i32, i32
  }
  func.func @transform_1(%arg0: i32) -> (i32, i32) {
    %c0_i32 = arith.constant 0 : i32
    %c0_i32_0 = arith.constant 0 : i32
    %c0_i32_1 = arith.constant 0 : i32
    return %c0_i32, %c0_i32_0 : i32, i32
  }
  func.func @transform_2(%arg0: i32) -> (i32, i32) {
    %c0_i32 = arith.constant 0 : i32
    %c0_i32_0 = arith.constant 0 : i32
    %c0_i32_1 = arith.constant 0 : i32
    return %c0_i32, %c0_i32_0 : i32, i32
  }
  func.func @transform_3(%arg0: i32) -> (i32, i32) {
    %c0_i32 = arith.constant 0 : i32
    %c0_i32_0 = arith.constant 0 : i32
    %c0_i32_1 = arith.constant 0 : i32
    return %c0_i32, %c0_i32_0 : i32, i32
  }
  func.func @transform_4(%arg0: i32) -> (i32, i32) {
    %c0_i32 = arith.constant 0 : i32
    %c0_i32_0 = arith.constant 0 : i32
    %c0_i32_1 = arith.constant 0 : i32
    return %c0_i32, %c0_i32_0 : i32, i32
  }
  func.func @transform_5(%arg0: i32) -> (i32, i32) {
    %c0_i32 = arith.constant 0 : i32
    %c0_i32_0 = arith.constant 0 : i32
    %c0_i32_1 = arith.constant 0 : i32
    return %c0_i32, %c0_i32_0 : i32, i32
  }
  func.func @transform_6(%arg0: i32) -> (i32, i32) {
    %c0_i32 = arith.constant 0 : i32
    %c0_i32_0 = arith.constant 0 : i32
    %c0_i32_1 = arith.constant 0 : i32
    return %c0_i32, %c0_i32_0 : i32, i32
  }
  func.func @transform_7(%arg0: i32) -> (i32, i32) {
    %c0_i32 = arith.constant 0 : i32
    %c0_i32_0 = arith.constant 0 : i32
    return %arg0, %c0_i32 : i32, i32
  }
}

</mosaic_0001>

<bundles_post_ra>
// kernel: encoder_forward.1
= control target key start
LH: loop header
LB: loop body
LE: loop exit
PB: predicated region body
PF: predicated region fallthrough
CT: control target
= control target key end

     0   :  { %vm1841_vm0 = vcmask 392192   ;;  %vm3395_vm1 = vmmov 0   ;;  %s4465_s1 = inlined_call_operand.vmem [shape: bf16[2352,256], index: 1, kind: input, shape index: {}]   ;;  %s4466_s0 = inlined_call_operand.vmem [shape: f32[8,2352], index: 0, kind: input, shape index: {}]   ;;  %s4467_s2 = inlined_call_operand.vmem [shape: f32[1,256], index: 2, kind: input, shape index: {}]   ;;  %s4468_s3 = inlined_call_operand.vmem [shape: bf16[256,128], index: 3, kind: input, shape index: {}]   ;;  %s4469_s5 = inlined_call_operand.vmem [shape: bf16[128,128], index: 5, kind: input, shape index: {}]   ;;  %s4470_s4 = inlined_call_operand.vmem [shape: f32[1,128], index: 4, kind: input, shape index: {}]   ;;  %s4471_s6 = inlined_call_operand.vmem [shape: f32[1,128], index: 6, kind: input, shape index: {}]   ;;  %s4472_s7 = inlined_call_operand.vmem [shape: bf16[8,128], index: 7, kind: output, shape index: {}]  }
   0x1   :  { %v2928_v0 = vld [vmem:[%s4465_s1 + $0x74] ss:$8 sps:$4 sm:$0xff]   ;;  %v2930_v1 = vld [vmem:[%s4465_s1 + $0x70] ss:$8 sps:$4 sm:$0xff]   ;;  %v2934_v4 = vld [vmem:[%s4465_s1 + $0x64] ss:$8 sps:$4 sm:$0xff]  }
   0x2   :  { %1845 = vmatprep.subr.bf16.mxu0 %v2928_v0  ;;  %v2931_v2 = vld [vmem:[%s4465_s1 + $0x174] ss:$8 sps:$4 sm:$0xff]   ;;  %v2933_v3 = vld [vmem:[%s4465_s1 + $0x170] ss:$8 sps:$4 sm:$0xff]   ;;  %v2936_v5 = vld [vmem:[%s4465_s1 + $0x60] ss:$8 sps:$4 sm:$0xff]  }
   0x3   :  { %1846 = vmatpush1.bf16.msra.mxu0 %v2930_v1  ;;  %1886 = vmatprep.subr.bf16.mxu1 %v2931_v2  ;;  %v2937_v6 = vld [vmem:[%s4465_s1 + $0x164] ss:$8 sps:$4 sm:$0xff]   ;;  %v2939_v7 = vld [vmem:[%s4465_s1 + $0x160] ss:$8 sps:$4 sm:$0xff]   ;;  %v2940_v8 = vld [vmem:[%s4465_s1 + $0x54] ss:$8 sps:$4 sm:$0xff]  }
   0x4   :  { %1887 = vmatpush1.bf16.msra.mxu1 %v2933_v3  ;;  %1847 = vmatprep.subr.bf16.mxu0 %v2934_v4  ;;  %v2942_v9 = vld [vmem:[%s4465_s1 + $0x50] ss:$8 sps:$4 sm:$0xff]   ;;  %v2943_v10 = vld [vmem:[%s4465_s1 + $0x154] ss:$8 sps:$4 sm:$0xff]   ;;  %v2946_v11 = vld [vmem:[%s4465_s1 + $0x44] ss:$8 sps:$4 sm:$0xff]  }
   0x5   :  { %1888 = vmatprep.subr.bf16.mxu1 %v2937_v6  ;;  %v2945_v12 = vld [vmem:[%s4465_s1 + $0x150] ss:$8 sps:$4 sm:$0xff]   ;;  %v2949_v13 = vld [vmem:[%s4465_s1 + $0x144] ss:$8 sps:$4 sm:$0xff]   ;;  %v2948_v14 = vld [vmem:[%s4465_s1 + $0x40] ss:$8 sps:$4 sm:$0xff]  }
   0x6   :  { %v2952_v15 = vld [vmem:[%s4465_s1 + $0x34] ss:$8 sps:$4 sm:$0xff]   ;;  %v2951_v16 = vld [vmem:[%s4465_s1 + $0x140] ss:$8 sps:$4 sm:$0xff]   ;;  %v2954_v18 = vld [vmem:[%s4465_s1 + $0x30] ss:$8 sps:$4 sm:$0xff]  }
   0x7   :  { %1848 = vmatpush1.bf16.msra.mxu0 %v2936_v5  ;;  %v2955_v17 = vld [vmem:[%s4465_s1 + $0x134] ss:$8 sps:$4 sm:$0xff]   ;;  %v2958_v19 = vld [vmem:[%s4465_s1 + $0x24] ss:$8 sps:$4 sm:$0xff]   ;;  %v2957_v20 = vld [vmem:[%s4465_s1 + $0x130] ss:$8 sps:$4 sm:$0xff]  }
   0x8   :  { %1849 = vmatprep.subr.bf16.mxu0 %v2940_v8  ;;  %1889 = vmatpush1.bf16.msra.mxu1 %v2939_v7  ;;  %v2961_v21 = vld [vmem:[%s4465_s1 + $0x124] ss:$8 sps:$4 sm:$0xff]   ;;  %v2960_v22 = vld [vmem:[%s4465_s1 + $0x20] ss:$8 sps:$4 sm:$0xff]   ;;  %v2964_v23 = vld [vmem:[%s4465_s1 + $0x14] ss:$8 sps:$4 sm:$0xff]  }
   0x9   :  { %1890 = vmatprep.subr.bf16.mxu1 %v2943_v10  ;;  %v2963_v24 = vld [vmem:[%s4465_s1 + $0x120] ss:$8 sps:$4 sm:$0xff]   ;;  %v2967_v25 = vld [vmem:[%s4465_s1 + $0x114] ss:$8 sps:$4 sm:$0xff]   ;;  %v2966_v26 = vld [vmem:[%s4465_s1 + $0x10] ss:$8 sps:$4 sm:$0xff]  }
   0xa   :  { %v2970_v27 = vld [vmem:[%s4465_s1 + $0x4] ss:$8 sps:$4 sm:$0xff]   ;;  %v2969_v28 = vld [vmem:[%s4465_s1 + $0x110] ss:$8 sps:$4 sm:$0xff]   ;;  %v2972_v30 = vld [vmem:[%s4465_s1] ss:$8 sps:$4 sm:$0xff]  }
   0xb   :  { %1850 = vmatpush1.bf16.msra.mxu0 %v2942_v9  ;;  %v2973_v29 = vld [vmem:[%s4465_s1 + $0x104] ss:$8 sps:$4 sm:$0xff]   ;;  %v2976_v31 = vld [vmem:[%s4465_s1 + $0xf4] ss:$8 sps:$4 sm:$0xff]   ;;  %v2975_v32 = vld [vmem:[%s4465_s1 + $0x100] ss:$8 sps:$4 sm:$0xff]  }
   0xc   :  { %1851 = vmatprep.subr.bf16.mxu0 %v2946_v11  ;;  %1891 = vmatpush1.bf16.msra.mxu1 %v2945_v12  ;;  %v2979_v33 = vld [vmem:[%s4465_s1 + $0x1f4] ss:$8 sps:$4 sm:$0xff]   ;;  %v2978_v34 = vld [vmem:[%s4465_s1 + $0xf0] ss:$8 sps:$4 sm:$0xff]   ;;  %v2982_v35 = vld [vmem:[%s4465_s1 + $0xe4] ss:$8 sps:$4 sm:$0xff]  }
   0xd   :  { %1892 = vmatprep.subr.bf16.mxu1 %v2949_v13  ;;  %v2981_v36 = vld [vmem:[%s4465_s1 + $0x1f0] ss:$8 sps:$4 sm:$0xff]   ;;  %v2985_v37 = vld [vmem:[%s4465_s1 + $0x1e4] ss:$8 sps:$4 sm:$0xff]   ;;  %v2984_v38 = vld [vmem:[%s4465_s1 + $0xe0] ss:$8 sps:$4 sm:$0xff]  }
   0xe   :  { %v2988_v39 = vld [vmem:[%s4465_s1 + $0xd4] ss:$8 sps:$4 sm:$0xff]   ;;  %v2987_v40 = vld [vmem:[%s4465_s1 + $0x1e0] ss:$8 sps:$4 sm:$0xff]   ;;  %v2990_v42 = vld [vmem:[%s4465_s1 + $0xd0] ss:$8 sps:$4 sm:$0xff]  }
   0xf   :  { %1852 = vmatpush1.bf16.msra.mxu0 %v2948_v14  ;;  %v2991_v41 = vld [vmem:[%s4465_s1 + $0x1d4] ss:$8 sps:$4 sm:$0xff]   ;;  %v2994_v43 = vld [vmem:[%s4465_s1 + $0xc4] ss:$8 sps:$4 sm:$0xff]   ;;  %v2993_v44 = vld [vmem:[%s4465_s1 + $0x1d0] ss:$8 sps:$4 sm:$0xff]  }
  0x10   :  { %1853 = vmatprep.subr.bf16.mxu0 %v2952_v15  ;;  %1893 = vmatpush1.bf16.msra.mxu1 %v2951_v16  ;;  %v2997_v45 = vld [vmem:[%s4465_s1 + $0x1c4] ss:$8 sps:$4 sm:$0xff]   ;;  %v2996_v47 = vld [vmem:[%s4465_s1 + $0xc0] ss:$8 sps:$4 sm:$0xff]   ;;  %v3000_v49 = vld [vmem:[%s4465_s1 + $0xb4] ss:$8 sps:$4 sm:$0xff]  }
  0x11   :  { %1894 = vmatprep.subr.bf16.mxu1 %v2955_v17  ;;  %v28_v46 = vld [vmem:[%s4466_s0 + $0x8] sm:$0xff]  ;;  %v30_v50 = vld [vmem:[%s4466_s0 + $0x18] sm:$0xff]  ;;  %v27_v4 = vld [vmem:[%s4466_s0] sm:$0xff] }
  0x12   :  { %v47_v48 = vpack.c.bf16 %v28_v46, %v28_v46  ;;  %v2999_v51 = vld [vmem:[%s4465_s1 + $0x1c0] ss:$8 sps:$4 sm:$0xff]   ;;  %v49_v52 = vpack.c.bf16 %v30_v50, %v30_v50  ;;  %v3003_v53 = vld [vmem:[%s4465_s1 + $0x1b4] ss:$8 sps:$4 sm:$0xff]   ;;  %v3002_v54 = vld [vmem:[%s4465_s1 + $0xb0] ss:$8 sps:$4 sm:$0xff]   ;;  %v46_v7 = vpack.c.bf16 %v27_v4, %v27_v4 }
  0x13   :  { %1854 = vmatpush1.bf16.msra.mxu0 %v2954_v18  ;;  %v3006_v55 = vld [vmem:[%s4465_s1 + $0xa4] ss:$8 sps:$4 sm:$0xff]   ;;  %v3005_v56 = vld [vmem:[%s4465_s1 + $0x1b0] ss:$8 sps:$4 sm:$0xff]   ;;  %v3008_v58 = vld [vmem:[%s4465_s1 + $0xa0] ss:$8 sps:$4 sm:$0xff]  }
  0x14   :  { %1855 = vmatprep.subr.bf16.mxu0 %v2958_v19  ;;  %1895 = vmatpush1.bf16.msra.mxu1 %v2957_v20  ;;  %v3009_v57 = vld [vmem:[%s4465_s1 + $0x1a4] ss:$8 sps:$4 sm:$0xff]   ;;  %v3012_v59 = vld [vmem:[%s4465_s1 + $0x94] ss:$8 sps:$4 sm:$0xff]   ;;  %v3011_v60 = vld [vmem:[%s4465_s1 + $0x1a0] ss:$8 sps:$4 sm:$0xff]  }
  0x15   :  { %1896 = vmatprep.subr.bf16.mxu1 %v2961_v21  ;;  %1877 = vmatprep.mubr.bf16.mxu0 %v47_v48  ;;  %v3015_v61 = vld [vmem:[%s4465_s1 + $0x194] ss:$8 sps:$4 sm:$0xff]   ;;  %v3014_v62 = vld [vmem:[%s4465_s1 + $0x90] ss:$8 sps:$4 sm:$0xff]   ;;  %v3018_v63 = vld [vmem:[%s4465_s1 + $0x84] ss:$8 sps:$4 sm:$0xff]  }
  0x16   :  { %1918 = vmatprep.mubr.bf16.mxu1 %v49_v52  ;;  %v3017_v0 = vld [vmem:[%s4465_s1 + $0x190] ss:$8 sps:$4 sm:$0xff]   ;;  %v3020_v1 = vld [vmem:[%s4465_s1 + $0x80] ss:$8 sps:$4 sm:$0xff]   ;;  %v3021_v2 = vld [vmem:[%s4465_s1 + $0x184] ss:$8 sps:$4 sm:$0xff]  }
  0x17   :  { %1856 = vmatpush1.bf16.msra.mxu0 %v2960_v22  ;;  %v3023_v3 = vld [vmem:[%s4465_s1 + $0x180] ss:$8 sps:$4 sm:$0xff]   ;;  %v3026_v5 = vld [vmem:[%s4465_s1 + $0x274] ss:$8 sps:$4 sm:$0xff]   ;;  %v3024_v9 = vld [vmem:[%s4465_s1 + $0x270] ss:$8 sps:$4 sm:$0xff]  }
  0x18   :  { %1857 = vmatprep.subr.bf16.mxu0 %v2964_v23  ;;  %1897 = vmatpush1.bf16.msra.mxu1 %v2963_v24  ;;  %v29_v6 = vld [vmem:[%s4466_s0 + $0x10] sm:$0xff]  ;;  %v3032_v11 = vld [vmem:[%s4465_s1 + $0x264] ss:$8 sps:$4 sm:$0xff]   ;;  %v3030_v14 = vld [vmem:[%s4465_s1 + $0x260] ss:$8 sps:$4 sm:$0xff]  }
  0x19   :  { %1898 = vmatprep.subr.bf16.mxu1 %v2967_v25  ;;  %v3029_v8 = vld [vmem:[%s4465_s1 + $0x374] ss:$8 sps:$4 sm:$0xff]   ;;  %v48_v10 = vpack.c.bf16 %v29_v6, %v29_v6  ;;  %v3027_v12 = vld [vmem:[%s4465_s1 + $0x370] ss:$8 sps:$4 sm:$0xff]   ;;  %v3035_v13 = vld [vmem:[%s4465_s1 + $0x364] ss:$8 sps:$4 sm:$0xff]  }
  0x1a   :  { %v3038_v15 = vld [vmem:[%s4465_s1 + $0x254] ss:$8 sps:$4 sm:$0xff]   ;;  %v3033_v16 = vld [vmem:[%s4465_s1 + $0x360] ss:$8 sps:$4 sm:$0xff]   ;;  %v3036_v18 = vld [vmem:[%s4465_s1 + $0x250] ss:$8 sps:$4 sm:$0xff]  }
  0x1b   :  { %1858 = vmatpush1.bf16.msra.mxu0 %v2966_v26  ;;  %v3041_v17 = vld [vmem:[%s4465_s1 + $0x354] ss:$8 sps:$4 sm:$0xff]   ;;  %v3044_v19 = vld [vmem:[%s4465_s1 + $0x244] ss:$8 sps:$4 sm:$0xff]   ;;  %v3039_v20 = vld [vmem:[%s4465_s1 + $0x350] ss:$8 sps:$4 sm:$0xff]  }
  0x1c   :  { %1859 = vmatprep.subr.bf16.mxu0 %v2970_v27  ;;  %1899 = vmatpush1.bf16.msra.mxu1 %v2969_v28  ;;  %v3047_v21 = vld [vmem:[%s4465_s1 + $0x344] ss:$8 sps:$4 sm:$0xff]   ;;  %v3042_v22 = vld [vmem:[%s4465_s1 + $0x240] ss:$8 sps:$4 sm:$0xff]   ;;  %v3050_v23 = vld [vmem:[%s4465_s1 + $0x234] ss:$8 sps:$4 sm:$0xff]  }
  0x1d   :  { %1900 = vmatprep.subr.bf16.mxu1 %v2973_v29  ;;  %v3045_v24 = vld [vmem:[%s4465_s1 + $0x340] ss:$8 sps:$4 sm:$0xff]   ;;  %v3053_v25 = vld [vmem:[%s4465_s1 + $0x334] ss:$8 sps:$4 sm:$0xff]   ;;  %v3048_v26 = vld [vmem:[%s4465_s1 + $0x230] ss:$8 sps:$4 sm:$0xff]  }
  0x1e   :  { %v3056_v27 = vld [vmem:[%s4465_s1 + $0x224] ss:$8 sps:$4 sm:$0xff]   ;;  %v3051_v28 = vld [vmem:[%s4465_s1 + $0x330] ss:$8 sps:$4 sm:$0xff]   ;;  %v3078_v50 = vld [vmem:[%s4465_s1 + $0x2e0] ss:$8 sps:$4 sm:$0xff]  }
  0x1f   :  { %1860 = vmatpush1.bf16.msra.mxu0 %v2972_v30  ;;  %v3059_v29 = vld [vmem:[%s4465_s1 + $0x324] ss:$8 sps:$4 sm:$0xff]   ;;  %v3054_v30 = vld [vmem:[%s4465_s1 + $0x220] ss:$8 sps:$4 sm:$0xff]   ;;  %v3072_v46 = vld [vmem:[%s4465_s1 + $0x2f0] ss:$8 sps:$4 sm:$0xff]  }
  0x20   :  { %1861 = vmatprep.subr.bf16.mxu0 %v2976_v31  ;;  %1901 = vmatpush1.bf16.msra.mxu1 %v2975_v32  ;;  %v3062_v31 = vld [vmem:[%s4465_s1 + $0x214] ss:$8 sps:$4 sm:$0xff]   ;;  %v3057_v32 = vld [vmem:[%s4465_s1 + $0x320] ss:$8 sps:$4 sm:$0xff]   ;;  %v3075_v48 = vld [vmem:[%s4465_s1 + $0x3f0] ss:$8 sps:$4 sm:$0xff]  }
  0x21   :  { %1902 = vmatprep.subr.bf16.mxu1 %v2979_v33  ;;  %v3065_v33 = vld [vmem:[%s4465_s1 + $0x314] ss:$8 sps:$4 sm:$0xff]   ;;  %v3081_v52 = vld [vmem:[%s4465_s1 + $0x3e0] ss:$8 sps:$4 sm:$0xff]   ;;  %v3108_v6 = vld [vmem:[%s4465_s1 + $0x290] ss:$8 sps:$4 sm:$0xff]  }
  0x22   :  { %v3105_v4 = vld [vmem:[%s4465_s1 + $0x3a0] ss:$8 sps:$4 sm:$0xff]  }
  0x23   :  { %1862 = vmatpush2.bf16.msra.mxu0 %v2978_v34  ;;  %v32_v34 = vld [vmem:[%s4466_s0 + $0x28] sm:$0xff] }
  0x24   :  { %1863 = vmatprep.subr.bf16.mxu0 %v2982_v35  ;;  %1903 = vmatpush2.bf16.msra.mxu1 %v2981_v36  ;;  %v3060_v35 = vld [vmem:[%s4465_s1 + $0x210] ss:$8 sps:$4 sm:$0xff]   ;;  %v51_v36 = vpack.c.bf16 %v32_v34, %v32_v34  ;;  %v3138_v34 = vld [vmem:[%s4465_s1 + $0x440] ss:$8 sps:$4 sm:$0xff]  }
  0x25   :  { %1904 = vmatprep.subr.bf16.mxu1 %v2985_v37  ;;  %v3068_v37 = vld [vmem:[%s4465_s1 + $0x204] ss:$8 sps:$4 sm:$0xff]  }
  0x27   :  { %1864 = vmatpush2.bf16.msra.mxu0 %v2984_v38  ;;  %v34_v38 = vld [vmem:[%s4466_s0 + $0x38] sm:$0xff] }
  0x28   :  { %1865 = vmatprep.subr.bf16.mxu0 %v2988_v39  ;;  %1905 = vmatpush2.bf16.msra.mxu1 %v2987_v40  ;;  %v3063_v39 = vld [vmem:[%s4465_s1 + $0x310] ss:$8 sps:$4 sm:$0xff]   ;;  %v53_v40 = vpack.c.bf16 %v34_v38, %v34_v38 }
  0x29   :  { %1906 = vmatprep.subr.bf16.mxu1 %v2991_v41  ;;  %v3071_v41 = vld [vmem:[%s4465_s1 + $0x304] ss:$8 sps:$4 sm:$0xff]   ;;  %v3144_v38 = vld [vmem:[%s4465_s1 + $0x430] ss:$8 sps:$4 sm:$0xff]  }
  0x2b   :  { %1866 = vmatpush2.bf16.msra.mxu0 %v2990_v42  ;;  %v3066_v42 = vld [vmem:[%s4465_s1 + $0x200] ss:$8 sps:$4 sm:$0xff]  }
  0x2c   :  { %1867 = vmatprep.subr.bf16.mxu0 %v2994_v43  ;;  %1907 = vmatpush2.bf16.msra.mxu1 %v2993_v44  ;;  %v3074_v43 = vld [vmem:[%s4465_s1 + $0x2f4] ss:$8 sps:$4 sm:$0xff]   ;;  %v3069_v44 = vld [vmem:[%s4465_s1 + $0x300] ss:$8 sps:$4 sm:$0xff]  }
  0x2d   :  { %1908 = vmatprep.subr.bf16.mxu1 %v2997_v45  ;;  %v3077_v45 = vld [vmem:[%s4465_s1 + $0x3f4] ss:$8 sps:$4 sm:$0xff]  }
  0x2f   :  { %1868 = vmatpush2.bf16.msra.mxu0 %v2996_v47  ;;  %v3080_v47 = vld [vmem:[%s4465_s1 + $0x2e4] ss:$8 sps:$4 sm:$0xff]  }
  0x30   :  { %1869 = vmatprep.subr.bf16.mxu0 %v3000_v49  ;;  %1909 = vmatpush2.bf16.msra.mxu1 %v2999_v51  ;;  %v3083_v49 = vld [vmem:[%s4465_s1 + $0x3e4] ss:$8 sps:$4 sm:$0xff]   ;;  %v3086_v51 = vld [vmem:[%s4465_s1 + $0x2d4] ss:$8 sps:$4 sm:$0xff]  }
  0x31   :  { %1910 = vmatprep.subr.bf16.mxu1 %v3003_v53  ;;  %v3089_v53 = vld [vmem:[%s4465_s1 + $0x3d4] ss:$8 sps:$4 sm:$0xff]  }
  0x33   :  { %1870 = vmatpush2.bf16.msra.mxu0 %v3002_v54  ;;  %v3084_v54 = vld [vmem:[%s4465_s1 + $0x2d0] ss:$8 sps:$4 sm:$0xff]  }
  0x34   :  { %1871 = vmatprep.subr.bf16.mxu0 %v3006_v55  ;;  %1911 = vmatpush2.bf16.msra.mxu1 %v3005_v56  ;;  %v3092_v55 = vld [vmem:[%s4465_s1 + $0x2c4] ss:$8 sps:$4 sm:$0xff]   ;;  %v3087_v56 = vld [vmem:[%s4465_s1 + $0x3d0] ss:$8 sps:$4 sm:$0xff]  }
  0x35   :  { %1912 = vmatprep.subr.bf16.mxu1 %v3009_v57  ;;  %v3095_v57 = vld [vmem:[%s4465_s1 + $0x3c4] ss:$8 sps:$4 sm:$0xff]  }
  0x37   :  { %1872 = vmatpush2.bf16.msra.mxu0 %v3008_v58  ;;  %v3090_v58 = vld [vmem:[%s4465_s1 + $0x2c0] ss:$8 sps:$4 sm:$0xff]  }
  0x38   :  { %1873 = vmatprep.subr.bf16.mxu0 %v3012_v59  ;;  %1913 = vmatpush2.bf16.msra.mxu1 %v3011_v60  ;;  %v3098_v59 = vld [vmem:[%s4465_s1 + $0x2b4] ss:$8 sps:$4 sm:$0xff]   ;;  %v3093_v60 = vld [vmem:[%s4465_s1 + $0x3c0] ss:$8 sps:$4 sm:$0xff]  }
  0x39   :  { %1914 = vmatprep.subr.bf16.mxu1 %v3015_v61  ;;  %v3101_v61 = vld [vmem:[%s4465_s1 + $0x3b4] ss:$8 sps:$4 sm:$0xff]  }
  0x3b   :  { %1874 = vmatpush2.bf16.msra.mxu0 %v3014_v62  ;;  %v3096_v62 = vld [vmem:[%s4465_s1 + $0x2b0] ss:$8 sps:$4 sm:$0xff]  }
  0x3c   :  { %1875 = vmatprep.subr.bf16.mxu0 %v3018_v63  ;;  %1915 = vmatpush2.bf16.msra.mxu1 %v3017_v0  ;;  %v3104_v63 = vld [vmem:[%s4465_s1 + $0x2a4] ss:$8 sps:$4 sm:$0xff]   ;;  %v3099_v0 = vld [vmem:[%s4465_s1 + $0x3b0] ss:$8 sps:$4 sm:$0xff]  }
  0x3d   :  { %1916 = vmatprep.subr.bf16.mxu1 %v3021_v2  ;;  %v3102_v2 = vld [vmem:[%s4465_s1 + $0x2a0] ss:$8 sps:$4 sm:$0xff]  }
  0x3f   :  { %1876 = vmatpush2.bf16.msra.mxu0 %v3020_v1  ;;  %v3107_v1 = vld [vmem:[%s4465_s1 + $0x3a4] ss:$8 sps:$4 sm:$0xff]  }
  0x40   :  { %1927 = vmatprep.subr.bf16.mxu0 %v3026_v5  ;;  %1917 = vmatpush2.bf16.msra.mxu1 %v3023_v3  ;;  %v3110_v3 = vld [vmem:[%s4465_s1 + $0x294] ss:$8 sps:$4 sm:$0xff]  }
  0x41   :  { %1968 = vmatprep.subr.bf16.mxu1 %v3029_v8  ;;  %v3113_v5 = vld [vmem:[%s4465_s1 + $0x394] ss:$8 sps:$4 sm:$0xff]   ;;  %v3111_v8 = vld [vmem:[%s4465_s1 + $0x390] ss:$8 sps:$4 sm:$0xff]  }
  0x42   :  { %1878 = vmatmul.mubr.bf16.vlgmr.msra.gmra.mxu0 %v46_v7  ;;  %v3116_v7 = vld [vmem:[%s4465_s1 + $0x284] ss:$8 sps:$4 sm:$0xff]  }
  0x43   :  { %1928 = vmatpush1.bf16.msra.mxu0 %v3024_v9  ;;  %1919 = vmatmul.mubr.bf16.vlgmr.msra.gmra.mxu1 %v48_v10  ;;  %v3114_v9 = vld [vmem:[%s4465_s1 + $0x280] ss:$8 sps:$4 sm:$0xff]   ;;  %v3119_v10 = vld [vmem:[%s4465_s1 + $0x384] ss:$8 sps:$4 sm:$0xff]  }
  0x44   :  { %1929 = vmatprep.subr.bf16.mxu0 %v3032_v11  ;;  %1969 = vmatpush1.bf16.msra.mxu1 %v3027_v12  ;;  %v3117_v11 = vld [vmem:[%s4465_s1 + $0x380] ss:$8 sps:$4 sm:$0xff]  }
  0x45   :  { %1970 = vmatprep.subr.bf16.mxu1 %v3035_v13  ;;  %1959 = vmatprep.mubr.bf16.mxu0 %v51_v36  ;;  %v31_v12 = vld [vmem:[%s4466_s0 + $0x20] sm:$0xff]  ;;  %v3122_v13 = vld [vmem:[%s4465_s1 + $0x474] ss:$8 sps:$4 sm:$0xff]  }
  0x46   :  { %2000 = vmatprep.mubr.bf16.mxu1 %v53_v40  ;;  %v3141_v36 = vld [vmem:[%s4465_s1 + $0x540] ss:$8 sps:$4 sm:$0xff]   ;;  %v3147_v40 = vld [vmem:[%s4465_s1 + $0x530] ss:$8 sps:$4 sm:$0xff]  }
  0x47   :  { %1930 = vmatpush1.bf16.msra.mxu0 %v3030_v14  ;;  %v33_v14 = vld [vmem:[%s4466_s0 + $0x30] sm:$0xff] }
  0x48   :  { %1931 = vmatprep.subr.bf16.mxu0 %v3038_v15  ;;  %1971 = vmatpush1.bf16.msra.mxu1 %v3033_v16  ;;  %v50_v15 = vpack.c.bf16 %v31_v12, %v31_v12  ;;  %v3125_v16 = vld [vmem:[%s4465_s1 + $0x574] ss:$8 sps:$4 sm:$0xff]   ;;  %v3201_v12 = vld [vmem:[%s4465_s1 + $0x5a0] ss:$8 sps:$4 sm:$0xff]  }
  0x49   :  { %1972 = vmatprep.subr.bf16.mxu1 %v3041_v17  ;;  %v3120_v17 = vld [vmem:[%s4465_s1 + $0x470] ss:$8 sps:$4 sm:$0xff]  }
  0x4b   :  { %1932 = vmatpush1.bf16.msra.mxu0 %v3036_v18  ;;  %v52_v18 = vpack.c.bf16 %v33_v14, %v33_v14  ;;  %v3204_v14 = vld [vmem:[%s4465_s1 + $0x490] ss:$8 sps:$4 sm:$0xff]  }
  0x4c   :  { %1933 = vmatprep.subr.bf16.mxu0 %v3044_v19  ;;  %1973 = vmatpush1.bf16.msra.mxu1 %v3039_v20  ;;  %v3128_v19 = vld [vmem:[%s4465_s1 + $0x464] ss:$8 sps:$4 sm:$0xff]   ;;  %v3123_v20 = vld [vmem:[%s4465_s1 + $0x570] ss:$8 sps:$4 sm:$0xff]  }
  0x4d   :  { %1974 = vmatprep.subr.bf16.mxu1 %v3047_v21  ;;  %v3131_v21 = vld [vmem:[%s4465_s1 + $0x564] ss:$8 sps:$4 sm:$0xff]  }
  0x4f   :  { %1934 = vmatpush1.bf16.msra.mxu0 %v3042_v22  ;;  %v36_v22 = vld [vmem:[%s4466_s0 + $0x48] sm:$0xff] }
  0x50   :  { %1935 = vmatprep.subr.bf16.mxu0 %v3050_v23  ;;  %1975 = vmatpush1.bf16.msra.mxu1 %v3045_v24  ;;  %v3126_v23 = vld [vmem:[%s4465_s1 + $0x460] ss:$8 sps:$4 sm:$0xff]   ;;  %v55_v24 = vpack.c.bf16 %v36_v22, %v36_v22 }
  0x51   :  { %1976 = vmatprep.subr.bf16.mxu1 %v3053_v25  ;;  %v3134_v25 = vld [vmem:[%s4465_s1 + $0x454] ss:$8 sps:$4 sm:$0xff]   ;;  %v3213_v22 = vld [vmem:[%s4465_s1 + $0x580] ss:$8 sps:$4 sm:$0xff]  }
  0x53   :  { %1936 = vmatpush1.bf16.msra.mxu0 %v3048_v26  ;;  %v38_v26 = vld [vmem:[%s4466_s0 + $0x58] sm:$0xff] }
  0x54   :  { %1937 = vmatprep.subr.bf16.mxu0 %v3056_v27  ;;  %1977 = vmatpush1.bf16.msra.mxu1 %v3051_v28  ;;  %v3129_v27 = vld [vmem:[%s4465_s1 + $0x560] ss:$8 sps:$4 sm:$0xff]   ;;  %v57_v28 = vpack.c.bf16 %v38_v26, %v38_v26  ;;  %v42_v26 = vld [vmem:[%s4466_s0 + $0x78] sm:$0xff] }
  0x55   :  { %1978 = vmatprep.subr.bf16.mxu1 %v3059_v29  ;;  %v3137_v29 = vld [vmem:[%s4465_s1 + $0x554] ss:$8 sps:$4 sm:$0xff]  }
  0x57   :  { %1938 = vmatpush1.bf16.msra.mxu0 %v3054_v30  ;;  %v3132_v30 = vld [vmem:[%s4465_s1 + $0x450] ss:$8 sps:$4 sm:$0xff]  }
  0x58   :  { %1939 = vmatprep.subr.bf16.mxu0 %v3062_v31  ;;  %1979 = vmatpush1.bf16.msra.mxu1 %v3057_v32  ;;  %v3140_v31 = vld [vmem:[%s4465_s1 + $0x444] ss:$8 sps:$4 sm:$0xff]   ;;  %v3135_v32 = vld [vmem:[%s4465_s1 + $0x550] ss:$8 sps:$4 sm:$0xff]  }
  0x59   :  { %1980 = vmatprep.subr.bf16.mxu1 %v3065_v33  ;;  %v3143_v33 = vld [vmem:[%s4465_s1 + $0x544] ss:$8 sps:$4 sm:$0xff]  }
  0x5b   :  { %1940 = vmatpush1.bf16.msra.mxu0 %v3060_v35  ;;  %v3146_v35 = vld [vmem:[%s4465_s1 + $0x434] ss:$8 sps:$4 sm:$0xff]  }
  0x5c   :  { %1941 = vmatprep.subr.bf16.mxu0 %v3068_v37  ;;  %1981 = vmatpush1.bf16.msra.mxu1 %v3063_v39  ;;  %v3149_v37 = vld [vmem:[%s4465_s1 + $0x534] ss:$8 sps:$4 sm:$0xff]   ;;  %v3152_v39 = vld [vmem:[%s4465_s1 + $0x424] ss:$8 sps:$4 sm:$0xff]  }
  0x5d   :  { %1982 = vmatprep.subr.bf16.mxu1 %v3071_v41  ;;  %v3155_v41 = vld [vmem:[%s4465_s1 + $0x524] ss:$8 sps:$4 sm:$0xff]  }
  0x5f   :  { %1942 = vmatpush1.bf16.msra.mxu0 %v3066_v42  ;;  %v3150_v42 = vld [vmem:[%s4465_s1 + $0x420] ss:$8 sps:$4 sm:$0xff]  }
  0x60   :  { %1943 = vmatprep.subr.bf16.mxu0 %v3074_v43  ;;  %1983 = vmatpush1.bf16.msra.mxu1 %v3069_v44  ;;  %v3158_v43 = vld [vmem:[%s4465_s1 + $0x414] ss:$8 sps:$4 sm:$0xff]   ;;  %v3153_v44 = vld [vmem:[%s4465_s1 + $0x520] ss:$8 sps:$4 sm:$0xff]  }
  0x61   :  { %1984 = vmatprep.subr.bf16.mxu1 %v3077_v45  ;;  %v3161_v45 = vld [vmem:[%s4465_s1 + $0x514] ss:$8 sps:$4 sm:$0xff]  }
  0x63   :  { %1944 = vmatpush2.bf16.msra.mxu0 %v3072_v46  ;;  %v3156_v46 = vld [vmem:[%s4465_s1 + $0x410] ss:$8 sps:$4 sm:$0xff]  }
  0x64   :  { %1945 = vmatprep.subr.bf16.mxu0 %v3080_v47  ;;  %1985 = vmatpush2.bf16.msra.mxu1 %v3075_v48  ;;  %v3164_v47 = vld [vmem:[%s4465_s1 + $0x404] ss:$8 sps:$4 sm:$0xff]   ;;  %v3159_v48 = vld [vmem:[%s4465_s1 + $0x510] ss:$8 sps:$4 sm:$0xff]  }
  0x65   :  { %1986 = vmatprep.subr.bf16.mxu1 %v3083_v49  ;;  %v3167_v49 = vld [vmem:[%s4465_s1 + $0x504] ss:$8 sps:$4 sm:$0xff]  }
  0x67   :  { %1946 = vmatpush2.bf16.msra.mxu0 %v3078_v50  ;;  %v3162_v50 = vld [vmem:[%s4465_s1 + $0x400] ss:$8 sps:$4 sm:$0xff]  }
  0x68   :  { %1947 = vmatprep.subr.bf16.mxu0 %v3086_v51  ;;  %1987 = vmatpush2.bf16.msra.mxu1 %v3081_v52  ;;  %v3170_v51 = vld [vmem:[%s4465_s1 + $0x4f4] ss:$8 sps:$4 sm:$0xff]   ;;  %v3165_v52 = vld [vmem:[%s4465_s1 + $0x500] ss:$8 sps:$4 sm:$0xff]  }
  0x69   :  { %1988 = vmatprep.subr.bf16.mxu1 %v3089_v53  ;;  %v3173_v53 = vld [vmem:[%s4465_s1 + $0x5f4] ss:$8 sps:$4 sm:$0xff]  }
  0x6b   :  { %1948 = vmatpush2.bf16.msra.mxu0 %v3084_v54  ;;  %v3168_v54 = vld [vmem:[%s4465_s1 + $0x4f0] ss:$8 sps:$4 sm:$0xff]  }
  0x6c   :  { %1949 = vmatprep.subr.bf16.mxu0 %v3092_v55  ;;  %1989 = vmatpush2.bf16.msra.mxu1 %v3087_v56  ;;  %v3176_v55 = vld [vmem:[%s4465_s1 + $0x4e4] ss:$8 sps:$4 sm:$0xff]   ;;  %v3171_v56 = vld [vmem:[%s4465_s1 + $0x5f0] ss:$8 sps:$4 sm:$0xff]  }
  0x6d   :  { %1990 = vmatprep.subr.bf16.mxu1 %v3095_v57  ;;  %v3179_v57 = vld [vmem:[%s4465_s1 + $0x5e4] ss:$8 sps:$4 sm:$0xff]  }
  0x6f   :  { %1950 = vmatpush2.bf16.msra.mxu0 %v3090_v58  ;;  %v3174_v58 = vld [vmem:[%s4465_s1 + $0x4e0] ss:$8 sps:$4 sm:$0xff]  }
  0x70   :  { %1951 = vmatprep.subr.bf16.mxu0 %v3098_v59  ;;  %1991 = vmatpush2.bf16.msra.mxu1 %v3093_v60  ;;  %v3182_v59 = vld [vmem:[%s4465_s1 + $0x4d4] ss:$8 sps:$4 sm:$0xff]   ;;  %v3177_v60 = vld [vmem:[%s4465_s1 + $0x5e0] ss:$8 sps:$4 sm:$0xff]  }
  0x71   :  { %1992 = vmatprep.subr.bf16.mxu1 %v3101_v61  ;;  %v3185_v61 = vld [vmem:[%s4465_s1 + $0x5d4] ss:$8 sps:$4 sm:$0xff]  }
  0x73   :  { %1952 = vmatpush2.bf16.msra.mxu0 %v3096_v62  ;;  %v3180_v62 = vld [vmem:[%s4465_s1 + $0x4d0] ss:$8 sps:$4 sm:$0xff]  }
  0x74   :  { %1953 = vmatprep.subr.bf16.mxu0 %v3104_v63  ;;  %1993 = vmatpush2.bf16.msra.mxu1 %v3099_v0  ;;  %v3188_v63 = vld [vmem:[%s4465_s1 + $0x4c4] ss:$8 sps:$4 sm:$0xff]   ;;  %v3183_v0 = vld [vmem:[%s4465_s1 + $0x5d0] ss:$8 sps:$4 sm:$0xff]  }
  0x75   :  { %1994 = vmatprep.subr.bf16.mxu1 %v3107_v1  ;;  %v3191_v1 = vld [vmem:[%s4465_s1 + $0x5c4] ss:$8 sps:$4 sm:$0xff]  }
  0x77   :  { %1954 = vmatpush2.bf16.msra.mxu0 %v3102_v2  ;;  %v3186_v2 = vld [vmem:[%s4465_s1 + $0x4c0] ss:$8 sps:$4 sm:$0xff]  }
  0x78   :  { %1955 = vmatprep.subr.bf16.mxu0 %v3110_v3  ;;  %1995 = vmatpush2.bf16.msra.mxu1 %v3105_v4  ;;  %v3194_v3 = vld [vmem:[%s4465_s1 + $0x4b4] ss:$8 sps:$4 sm:$0xff]   ;;  %v3189_v4 = vld [vmem:[%s4465_s1 + $0x5c0] ss:$8 sps:$4 sm:$0xff]  }
  0x79   :  { %1996 = vmatprep.subr.bf16.mxu1 %v3113_v5  ;;  %v3197_v5 = vld [vmem:[%s4465_s1 + $0x5b4] ss:$8 sps:$4 sm:$0xff]  }
  0x7b   :  { %1956 = vmatpush2.bf16.msra.mxu0 %v3108_v6  ;;  %v3192_v6 = vld [vmem:[%s4465_s1 + $0x4b0] ss:$8 sps:$4 sm:$0xff]  }
  0x7c   :  { %1957 = vmatprep.subr.bf16.mxu0 %v3116_v7  ;;  %1997 = vmatpush2.bf16.msra.mxu1 %v3111_v8  ;;  %v3200_v7 = vld [vmem:[%s4465_s1 + $0x4a4] ss:$8 sps:$4 sm:$0xff]   ;;  %v3195_v8 = vld [vmem:[%s4465_s1 + $0x5b0] ss:$8 sps:$4 sm:$0xff]  }
  0x7d   :  { %1998 = vmatprep.subr.bf16.mxu1 %v3119_v10  ;;  %v3198_v10 = vld [vmem:[%s4465_s1 + $0x4a0] ss:$8 sps:$4 sm:$0xff]  }
  0x7f   :  { %1958 = vmatpush2.bf16.msra.mxu0 %v3114_v9  ;;  %v3203_v9 = vld [vmem:[%s4465_s1 + $0x5a4] ss:$8 sps:$4 sm:$0xff]  }
  0x80   :  { %2009 = vmatprep.subr.bf16.mxu0 %v3122_v13  ;;  %1999 = vmatpush2.bf16.msra.mxu1 %v3117_v11  ;;  %v3206_v11 = vld [vmem:[%s4465_s1 + $0x494] ss:$8 sps:$4 sm:$0xff]  }
  0x81   :  { %2050 = vmatprep.subr.bf16.mxu1 %v3125_v16  ;;  %v3209_v13 = vld [vmem:[%s4465_s1 + $0x594] ss:$8 sps:$4 sm:$0xff]   ;;  %v3207_v16 = vld [vmem:[%s4465_s1 + $0x590] ss:$8 sps:$4 sm:$0xff]  }
  0x82   :  { %1960 = vmatmul.mubr.bf16.vlgmr.msra.gmra.mxu0 %v50_v15  ;;  %v3212_v15 = vld [vmem:[%s4465_s1 + $0x484] ss:$8 sps:$4 sm:$0xff]  }
  0x83   :  { %2010 = vmatpush1.bf16.msra.mxu0 %v3120_v17  ;;  %2001 = vmatmul.mubr.bf16.vlgmr.msra.gmra.mxu1 %v52_v18  ;;  %v3210_v17 = vld [vmem:[%s4465_s1 + $0x480] ss:$8 sps:$4 sm:$0xff]   ;;  %v3215_v18 = vld [vmem:[%s4465_s1 + $0x584] ss:$8 sps:$4 sm:$0xff]  }
  0x84   :  { %2011 = vmatprep.subr.bf16.mxu0 %v3128_v19  ;;  %2051 = vmatpush1.bf16.msra.mxu1 %v3123_v20  ;;  %v35_v19 = vld [vmem:[%s4466_s0 + $0x40] sm:$0xff]  ;;  %v3218_v20 = vld [vmem:[%s4465_s1 + $0x674] ss:$8 sps:$4 sm:$0xff]  }
  0x85   :  { %2041 = vmatprep.mubr.bf16.mxu0 %v55_v24  ;;  %2052 = vmatprep.subr.bf16.mxu1 %v3131_v21  ;;  %v40_v21 = vld [vmem:[%s4466_s0 + $0x68] sm:$0xff]  ;;  %v54_v24 = vpack.c.bf16 %v35_v19, %v35_v19  ;;  %v361_v19 = vlaneseq }
  0x86   :  { %2082 = vmatprep.mubr.bf16.mxu1 %v57_v28  ;;  %v59_v28 = vpack.c.bf16 %v40_v21, %v40_v21  ;;  %v3297_v21 = vld [vmem:[%s4465_s1 + $0x7a0] ss:$8 sps:$4 sm:$0xff]  }
  0x87   :  { %2012 = vmatpush1.bf16.msra.mxu0 %v3126_v23  ;;  %v37_v23 = vld [vmem:[%s4466_s0 + $0x50] sm:$0xff] }
  0x88   :  { %2013 = vmatprep.subr.bf16.mxu0 %v3134_v25  ;;  %2053 = vmatpush1.bf16.msra.mxu1 %v3129_v27  ;;  %v3221_v25 = vld [vmem:[%s4465_s1 + $0x774] ss:$8 sps:$4 sm:$0xff]   ;;  %v3216_v27 = vld [vmem:[%s4465_s1 + $0x670] ss:$8 sps:$4 sm:$0xff]  }
  0x89   :  { %2054 = vmatprep.subr.bf16.mxu1 %v3137_v29  ;;  %v56_v29 = vpack.c.bf16 %v37_v23, %v37_v23  ;;  %v3300_v23 = vld [vmem:[%s4465_s1 + $0x690] ss:$8 sps:$4 sm:$0xff]  }
  0x8b   :  { %2014 = vmatpush1.bf16.msra.mxu0 %v3132_v30  ;;  %v3224_v30 = vld [vmem:[%s4465_s1 + $0x664] ss:$8 sps:$4 sm:$0xff]  }
  0x8c   :  { %2015 = vmatprep.subr.bf16.mxu0 %v3140_v31  ;;  %2055 = vmatpush1.bf16.msra.mxu1 %v3135_v32  ;;  %v3219_v31 = vld [vmem:[%s4465_s1 + $0x770] ss:$8 sps:$4 sm:$0xff]   ;;  %v61_v32 = vpack.c.bf16 %v42_v26, %v42_v26 }
  0x8d   :  { %2056 = vmatprep.subr.bf16.mxu1 %v3143_v33  ;;  %v3227_v33 = vld [vmem:[%s4465_s1 + $0x764] ss:$8 sps:$4 sm:$0xff]   ;;  %v3303_v26 = vld [vmem:[%s4465_s1 + $0x790] ss:$8 sps:$4 sm:$0xff]  }
  0x8f   :  { %2016 = vmatpush1.bf16.msra.mxu0 %v3138_v34  ;;  %v3222_v34 = vld [vmem:[%s4465_s1 + $0x660] ss:$8 sps:$4 sm:$0xff]  }
  0x90   :  { %2017 = vmatprep.subr.bf16.mxu0 %v3146_v35  ;;  %2057 = vmatpush1.bf16.msra.mxu1 %v3141_v36  ;;  %v3230_v35 = vld [vmem:[%s4465_s1 + $0x654] ss:$8 sps:$4 sm:$0xff]   ;;  %v3225_v36 = vld [vmem:[%s4465_s1 + $0x760] ss:$8 sps:$4 sm:$0xff]  }
  0x91   :  { %2058 = vmatprep.subr.bf16.mxu1 %v3149_v37  ;;  %v3233_v37 = vld [vmem:[%s4465_s1 + $0x754] ss:$8 sps:$4 sm:$0xff]  }
  0x93   :  { %2018 = vmatpush1.bf16.msra.mxu0 %v3144_v38  ;;  %v3228_v38 = vld [vmem:[%s4465_s1 + $0x650] ss:$8 sps:$4 sm:$0xff]  }
  0x94   :  { %2019 = vmatprep.subr.bf16.mxu0 %v3152_v39  ;;  %2059 = vmatpush1.bf16.msra.mxu1 %v3147_v40  ;;  %v3236_v39 = vld [vmem:[%s4465_s1 + $0x644] ss:$8 sps:$4 sm:$0xff]   ;;  %v3231_v40 = vld [vmem:[%s4465_s1 + $0x750] ss:$8 sps:$4 sm:$0xff]  }
  0x95   :  { %2060 = vmatprep.subr.bf16.mxu1 %v3155_v41  ;;  %v3239_v41 = vld [vmem:[%s4465_s1 + $0x744] ss:$8 sps:$4 sm:$0xff]  }
  0x97   :  { %2020 = vmatpush1.bf16.msra.mxu0 %v3150_v42  ;;  %v3234_v42 = vld [vmem:[%s4465_s1 + $0x640] ss:$8 sps:$4 sm:$0xff]  }
  0x98   :  { %2021 = vmatprep.subr.bf16.mxu0 %v3158_v43  ;;  %2061 = vmatpush1.bf16.msra.mxu1 %v3153_v44  ;;  %v3242_v43 = vld [vmem:[%s4465_s1 + $0x634] ss:$8 sps:$4 sm:$0xff]   ;;  %v3237_v44 = vld [vmem:[%s4465_s1 + $0x740] ss:$8 sps:$4 sm:$0xff]  }
  0x99   :  { %2062 = vmatprep.subr.bf16.mxu1 %v3161_v45  ;;  %v3245_v45 = vld [vmem:[%s4465_s1 + $0x734] ss:$8 sps:$4 sm:$0xff]  }
  0x9b   :  { %2022 = vmatpush1.bf16.msra.mxu0 %v3156_v46  ;;  %v3240_v46 = vld [vmem:[%s4465_s1 + $0x630] ss:$8 sps:$4 sm:$0xff]  }
  0x9c   :  { %2023 = vmatprep.subr.bf16.mxu0 %v3164_v47  ;;  %2063 = vmatpush1.bf16.msra.mxu1 %v3159_v48  ;;  %v3248_v47 = vld [vmem:[%s4465_s1 + $0x624] ss:$8 sps:$4 sm:$0xff]   ;;  %v3243_v48 = vld [vmem:[%s4465_s1 + $0x730] ss:$8 sps:$4 sm:$0xff]  }
  0x9d   :  { %2064 = vmatprep.subr.bf16.mxu1 %v3167_v49  ;;  %v3251_v49 = vld [vmem:[%s4465_s1 + $0x724] ss:$8 sps:$4 sm:$0xff]  }
  0x9f   :  { %2024 = vmatpush1.bf16.msra.mxu0 %v3162_v50  ;;  %v3246_v50 = vld [vmem:[%s4465_s1 + $0x620] ss:$8 sps:$4 sm:$0xff]  }
  0xa0   :  { %2025 = vmatprep.subr.bf16.mxu0 %v3170_v51  ;;  %2065 = vmatpush1.bf16.msra.mxu1 %v3165_v52  ;;  %v3254_v51 = vld [vmem:[%s4465_s1 + $0x614] ss:$8 sps:$4 sm:$0xff]   ;;  %v3249_v52 = vld [vmem:[%s4465_s1 + $0x720] ss:$8 sps:$4 sm:$0xff]  }
  0xa1   :  { %2066 = vmatprep.subr.bf16.mxu1 %v3173_v53  ;;  %v3257_v53 = vld [vmem:[%s4465_s1 + $0x714] ss:$8 sps:$4 sm:$0xff]  }
  0xa3   :  { %2026 = vmatpush2.bf16.msra.mxu0 %v3168_v54  ;;  %v3252_v54 = vld [vmem:[%s4465_s1 + $0x610] ss:$8 sps:$4 sm:$0xff]  }
  0xa4   :  { %2027 = vmatprep.subr.bf16.mxu0 %v3176_v55  ;;  %2067 = vmatpush2.bf16.msra.mxu1 %v3171_v56  ;;  %v3260_v55 = vld [vmem:[%s4465_s1 + $0x604] ss:$8 sps:$4 sm:$0xff]   ;;  %v3255_v56 = vld [vmem:[%s4465_s1 + $0x710] ss:$8 sps:$4 sm:$0xff]  }
  0xa5   :  { %2068 = vmatprep.subr.bf16.mxu1 %v3179_v57  ;;  %v3263_v57 = vld [vmem:[%s4465_s1 + $0x704] ss:$8 sps:$4 sm:$0xff]  }
  0xa7   :  { %2028 = vmatpush2.bf16.msra.mxu0 %v3174_v58  ;;  %v3258_v58 = vld [vmem:[%s4465_s1 + $0x600] ss:$8 sps:$4 sm:$0xff]  }
  0xa8   :  { %2029 = vmatprep.subr.bf16.mxu0 %v3182_v59  ;;  %2069 = vmatpush2.bf16.msra.mxu1 %v3177_v60  ;;  %v3266_v59 = vld [vmem:[%s4465_s1 + $0x6f4] ss:$8 sps:$4 sm:$0xff]   ;;  %v3261_v60 = vld [vmem:[%s4465_s1 + $0x700] ss:$8 sps:$4 sm:$0xff]  }
  0xa9   :  { %2070 = vmatprep.subr.bf16.mxu1 %v3185_v61  ;;  %v3269_v61 = vld [vmem:[%s4465_s1 + $0x7f4] ss:$8 sps:$4 sm:$0xff]  }
  0xab   :  { %2030 = vmatpush2.bf16.msra.mxu0 %v3180_v62  ;;  %v3264_v62 = vld [vmem:[%s4465_s1 + $0x6f0] ss:$8 sps:$4 sm:$0xff]  }
  0xac   :  { %2031 = vmatprep.subr.bf16.mxu0 %v3188_v63  ;;  %2071 = vmatpush2.bf16.msra.mxu1 %v3183_v0  ;;  %v3272_v63 = vld [vmem:[%s4465_s1 + $0x6e4] ss:$8 sps:$4 sm:$0xff]   ;;  %v3267_v0 = vld [vmem:[%s4465_s1 + $0x7f0] ss:$8 sps:$4 sm:$0xff]  }
  0xad   :  { %2072 = vmatprep.subr.bf16.mxu1 %v3191_v1  ;;  %v3275_v1 = vld [vmem:[%s4465_s1 + $0x7e4] ss:$8 sps:$4 sm:$0xff]  }
  0xaf   :  { %2032 = vmatpush2.bf16.msra.mxu0 %v3186_v2  ;;  %v3270_v2 = vld [vmem:[%s4465_s1 + $0x6e0] ss:$8 sps:$4 sm:$0xff]  }
  0xb0   :  { %2033 = vmatprep.subr.bf16.mxu0 %v3194_v3  ;;  %2073 = vmatpush2.bf16.msra.mxu1 %v3189_v4  ;;  %v3278_v3 = vld [vmem:[%s4465_s1 + $0x6d4] ss:$8 sps:$4 sm:$0xff]   ;;  %v3273_v4 = vld [vmem:[%s4465_s1 + $0x7e0] ss:$8 sps:$4 sm:$0xff]  }
  0xb1   :  { %2074 = vmatprep.subr.bf16.mxu1 %v3197_v5  ;;  %v3281_v5 = vld [vmem:[%s4465_s1 + $0x7d4] ss:$8 sps:$4 sm:$0xff]  }
  0xb3   :  { %2034 = vmatpush2.bf16.msra.mxu0 %v3192_v6  ;;  %v3276_v6 = vld [vmem:[%s4465_s1 + $0x6d0] ss:$8 sps:$4 sm:$0xff]  }
  0xb4   :  { %2035 = vmatprep.subr.bf16.mxu0 %v3200_v7  ;;  %2075 = vmatpush2.bf16.msra.mxu1 %v3195_v8  ;;  %v3284_v7 = vld [vmem:[%s4465_s1 + $0x6c4] ss:$8 sps:$4 sm:$0xff]   ;;  %v3279_v8 = vld [vmem:[%s4465_s1 + $0x7d0] ss:$8 sps:$4 sm:$0xff]  }
  0xb5   :  { %2076 = vmatprep.subr.bf16.mxu1 %v3203_v9  ;;  %v3287_v9 = vld [vmem:[%s4465_s1 + $0x7c4] ss:$8 sps:$4 sm:$0xff]  }
  0xb7   :  { %2036 = vmatpush2.bf16.msra.mxu0 %v3198_v10  ;;  %v3282_v10 = vld [vmem:[%s4465_s1 + $0x6c0] ss:$8 sps:$4 sm:$0xff]  }
  0xb8   :  { %2037 = vmatprep.subr.bf16.mxu0 %v3206_v11  ;;  %2077 = vmatpush2.bf16.msra.mxu1 %v3201_v12  ;;  %v3290_v11 = vld [vmem:[%s4465_s1 + $0x6b4] ss:$8 sps:$4 sm:$0xff]   ;;  %v3285_v12 = vld [vmem:[%s4465_s1 + $0x7c0] ss:$8 sps:$4 sm:$0xff]  }
  0xb9   :  { %2078 = vmatprep.subr.bf16.mxu1 %v3209_v13  ;;  %v3293_v13 = vld [vmem:[%s4465_s1 + $0x7b4] ss:$8 sps:$4 sm:$0xff]  }
  0xbb   :  { %2038 = vmatpush2.bf16.msra.mxu0 %v3204_v14  ;;  %v3288_v14 = vld [vmem:[%s4465_s1 + $0x6b0] ss:$8 sps:$4 sm:$0xff]  }
  0xbc   :  { %2039 = vmatprep.subr.bf16.mxu0 %v3212_v15  ;;  %2079 = vmatpush2.bf16.msra.mxu1 %v3207_v16  ;;  %v3296_v15 = vld [vmem:[%s4465_s1 + $0x6a4] ss:$8 sps:$4 sm:$0xff]   ;;  %v3291_v16 = vld [vmem:[%s4465_s1 + $0x7b0] ss:$8 sps:$4 sm:$0xff]  }
  0xbd   :  { %2080 = vmatprep.subr.bf16.mxu1 %v3215_v18  ;;  %v3294_v18 = vld [vmem:[%s4465_s1 + $0x6a0] ss:$8 sps:$4 sm:$0xff]  }
  0xbf   :  { %2040 = vmatpush2.bf16.msra.mxu0 %v3210_v17  ;;  %v3299_v17 = vld [vmem:[%s4465_s1 + $0x7a4] ss:$8 sps:$4 sm:$0xff]  }
  0xc0   :  { %2091 = vmatprep.subr.bf16.mxu0 %v3218_v20  ;;  %2081 = vmatpush2.bf16.msra.mxu1 %v3213_v22  ;;  %v3302_v20 = vld [vmem:[%s4465_s1 + $0x694] ss:$8 sps:$4 sm:$0xff]  }
  0xc1   :  { %2132 = vmatprep.subr.bf16.mxu1 %v3221_v25  ;;  %v3305_v22 = vld [vmem:[%s4465_s1 + $0x794] ss:$8 sps:$4 sm:$0xff]   ;;  %v3308_v25 = vld [vmem:[%s4465_s1 + $0x684] ss:$8 sps:$4 sm:$0xff]  }
  0xc2   :  { %2042 = vmatmul.mubr.bf16.vlgmr.msra.gmra.mxu0 %v54_v24  ;;  %v362_v24 = vshrl.u32 %v361_v19, 7  ;;  %v3342_v19 = vld [vmem:[%s4465_s1 + $0x8d0] ss:$8 sps:$4 sm:$0xff]  }
  0xc3   :  { %2092 = vmatpush1.bf16.msra.mxu0 %v3216_v27  ;;  %2123 = vmatprep.mubr.bf16.mxu0 %v59_v28  ;;  %v3311_v27 = vld [vmem:[%s4465_s1 + $0x784] ss:$8 sps:$4 sm:$0xff]   ;;  %v3306_v28 = vld [vmem:[%s4465_s1 + $0x680] ss:$8 sps:$4 sm:$0xff]  }
  0xc4   :  { %2083 = vmatmul.mubr.bf16.vlgmr.msra.gmra.mxu1 %v56_v29  ;;  %2093 = vmatprep.subr.bf16.mxu0 %v3224_v30  ;;  %v363_v29 = vsub.s32 0, %v362_v24  ;;  %v39_v30 = vld [vmem:[%s4466_s0 + $0x60] sm:$0xff] }
  0xc5   :  { %2133 = vmatpush1.bf16.msra.mxu1 %v3219_v31  ;;  %2164 = vmatprep.mubr.bf16.mxu1 %v61_v32  ;;  %v359_v31 = vld [vmem:[%s4467_s2] sm:$0x3]  ;;  %v3314_v32 = vld [vmem:[%s4465_s1 + $0x874] ss:$8 sps:$4 sm:$0xff]  }
  0xc6   :  { %2134 = vmatprep.subr.bf16.mxu1 %v3227_v33  ;;  %v44_v33 = vld [vmem:[%s4466_s0 + $0x88] sm:$0xff] }
  0xc7   :  { %2094 = vmatpush1.bf16.msra.mxu0 %v3222_v34  ;;  %v3309_v34 = vld [vmem:[%s4465_s1 + $0x780] ss:$8 sps:$4 sm:$0xff]  }
  0xc8   :  { %2095 = vmatprep.subr.bf16.mxu0 %v3230_v35  ;;  %v367_v35 = vsub.s32 1, %v362_v24  ;;  %v3356_v24 = vld [vmem:[%s4465_s1 + $0x8a4] ss:$8 sps:$4 sm:$0xff]  }
  0xc9   :  { %2135 = vmatpush1.bf16.msra.mxu1 %v3225_v36  ;;  %v41_v36 = vld [vmem:[%s4466_s0 + $0x70] sm:$0xff] }
  0xca   :  { %2136 = vmatprep.subr.bf16.mxu1 %v3233_v37  ;;  %v58_v37 = vpack.c.bf16 %v39_v30, %v39_v30  ;;  %v43_v30 = vld [vmem:[%s4466_s0 + $0x80] sm:$0xff] }
  0xcb   :  { %2096 = vmatpush1.bf16.msra.mxu0 %v3228_v38  ;;  %v3353_v38 = vld [vmem:[%s4465_s1 + $0x924] ss:$8 sps:$4 sm:$0xff]  }
  0xcc   :  { %2097 = vmatprep.subr.bf16.mxu0 %v3236_v39  ;;  %v364_v39 = vrot.slane %v359_v31, %v363_v29  ;;  %v3366_v29 = vld [vmem:[%s4465_s1 + $0x880] ss:$8 sps:$4 sm:$0xff]  }
  0xcd   :  { %2137 = vmatpush1.bf16.msra.mxu1 %v3231_v40  ;;  %v3312_v40 = vld [vmem:[%s4465_s1 + $0x870] ss:$8 sps:$4 sm:$0xff]  }
  0xce   :  { %2138 = vmatprep.subr.bf16.mxu1 %v3239_v41  ;;  %v63_v41 = vpack.c.bf16 %v44_v33, %v44_v33 }
  0xcf   :  { %2098 = vmatpush1.bf16.msra.mxu0 %v3234_v42  ;;  %v60_v42 = vpack.c.bf16 %v41_v36, %v41_v36 }
  0xd0   :  { %2099 = vmatprep.subr.bf16.mxu0 %v3242_v43  ;;  %v3317_v43 = vld [vmem:[%s4465_s1 + $0x864] ss:$8 sps:$4 sm:$0xff]  }
  0xd1   :  { %2139 = vmatpush1.bf16.msra.mxu1 %v3237_v44  ;;  %v368_v44 = vrot.slane %v359_v31, %v367_v35  ;;  %v62_v31 = vpack.c.bf16 %v43_v30, %v43_v30 }
  0xd2   :  { %2140 = vmatprep.subr.bf16.mxu1 %v3245_v45  ;;  %v3351_v45 = vld [vmem:[%s4465_s1 + $0x920] ss:$8 sps:$4 sm:$0xff]  }
  0xd3   :  { %2100 = vmatpush1.bf16.msra.mxu0 %v3240_v46 }
  0xd4   :  { %2101 = vmatprep.subr.bf16.mxu0 %v3248_v47  ;;  %v3359_v47 = vld [vmem:[%s4465_s1 + $0x914] ss:$8 sps:$4 sm:$0xff]  }
  0xd5   :  { %2141 = vmatpush1.bf16.msra.mxu1 %v3243_v48 }
  0xd6   :  { %2142 = vmatprep.subr.bf16.mxu1 %v3251_v49  ;;  %v3315_v49 = vld [vmem:[%s4465_s1 + $0x860] ss:$8 sps:$4 sm:$0xff]  }
  0xd7   :  { %2102 = vmatpush1.bf16.msra.mxu0 %v3246_v50 }
  0xd8   :  { %2103 = vmatprep.subr.bf16.mxu0 %v3254_v51 }
  0xd9   :  { %2143 = vmatpush1.bf16.msra.mxu1 %v3249_v52  ;;  %v3320_v52 = vld [vmem:[%s4465_s1 + $0x854] ss:$8 sps:$4 sm:$0xff]  }
  0xda   :  { %2144 = vmatprep.subr.bf16.mxu1 %v3257_v53 }
  0xdb   :  { %2104 = vmatpush1.bf16.msra.mxu0 %v3252_v54 }
  0xdc   :  { %2105 = vmatprep.subr.bf16.mxu0 %v3260_v55  ;;  %v3357_v55 = vld [vmem:[%s4465_s1 + $0x910] ss:$8 sps:$4 sm:$0xff]  }
  0xdd   :  { %2145 = vmatpush1.bf16.msra.mxu1 %v3255_v56  ;;  %v3393_v56 = vmov 0  }
  0xde   :  { %2146 = vmatprep.subr.bf16.mxu1 %v3263_v57 }
  0xdf   :  { %2106 = vmatpush1.bf16.msra.mxu0 %v3258_v58 }
  0xe0   :  { %2107 = vmatprep.subr.bf16.mxu0 %v3266_v59  ;;  %v3365_v59 = vld [vmem:[%s4465_s1 + $0x904] ss:$8 sps:$4 sm:$0xff]  }
  0xe1   :  { %2147 = vmatpush1.bf16.msra.mxu1 %v3261_v60 }
  0xe2   :  { %2148 = vmatprep.subr.bf16.mxu1 %v3269_v61  ;;  %v3318_v61 = vld [vmem:[%s4465_s1 + $0x850] ss:$8 sps:$4 sm:$0xff]  }
  0xe3   :  { %2108 = vmatpush2.bf16.msra.mxu0 %v3264_v62 }
  0xe4   :  { %2109 = vmatprep.subr.bf16.mxu0 %v3272_v63  ;;  %v3323_v63 = vld [vmem:[%s4465_s1 + $0x844] ss:$8 sps:$4 sm:$0xff]  }
  0xe5   :  { %2149 = vmatpush2.bf16.msra.mxu1 %v3267_v0 }
  0xe6   :  { %2150 = vmatprep.subr.bf16.mxu1 %v3275_v1  ;;  %v3363_v1 = vld [vmem:[%s4465_s1 + $0x900] ss:$8 sps:$4 sm:$0xff]  }
  0xe7   :  { %2110 = vmatpush2.bf16.msra.mxu0 %v3270_v2  ;;  %v45_v2 = vld [vmem:[%s4466_s0 + $0x90] sm:$0xff] }
  0xe8   :  { %2111 = vmatprep.subr.bf16.mxu0 %v3278_v3 }
  0xe9   :  { %2151 = vmatpush2.bf16.msra.mxu1 %v3273_v4  ;;  %v3321_v4 = vld [vmem:[%s4465_s1 + $0x840] ss:$8 sps:$4 sm:$0xff]  }
  0xea   :  { %2152 = vmatprep.subr.bf16.mxu1 %v3281_v5  ;;  %v3326_v5 = vld [vmem:[%s4465_s1 + $0x834] ss:$8 sps:$4 sm:$0xff]  }
  0xeb   :  { %2112 = vmatpush2.bf16.msra.mxu0 %v3276_v6  ;;  %v64_v6 = vpack.c.bf16 %v45_v2, %v45_v2 }
  0xec   :  { %2113 = vmatprep.subr.bf16.mxu0 %v3284_v7  ;;  %v3324_v7 = vld [vmem:[%s4465_s1 + $0x830] ss:$8 sps:$4 sm:$0xff]  }
  0xed   :  { %2153 = vmatpush2.bf16.msra.mxu1 %v3279_v8  ;;  %v3329_v8 = vld [vmem:[%s4465_s1 + $0x824] ss:$8 sps:$4 sm:$0xff]  }
  0xee   :  { %2154 = vmatprep.subr.bf16.mxu1 %v3287_v9  ;;  %v3327_v9 = vld [vmem:[%s4465_s1 + $0x820] ss:$8 sps:$4 sm:$0xff]  }
  0xef   :  { %2114 = vmatpush2.bf16.msra.mxu0 %v3282_v10  ;;  %v3332_v10 = vld [vmem:[%s4465_s1 + $0x814] ss:$8 sps:$4 sm:$0xff]  }
  0xf0   :  { %2115 = vmatprep.subr.bf16.mxu0 %v3290_v11  ;;  %v3330_v11 = vld [vmem:[%s4465_s1 + $0x810] ss:$8 sps:$4 sm:$0xff]  }
  0xf1   :  { %2155 = vmatpush2.bf16.msra.mxu1 %v3285_v12  ;;  %v3335_v12 = vld [vmem:[%s4465_s1 + $0x804] ss:$8 sps:$4 sm:$0xff]  }
  0xf2   :  { %2156 = vmatprep.subr.bf16.mxu1 %v3293_v13  ;;  %v3333_v13 = vld [vmem:[%s4465_s1 + $0x800] ss:$8 sps:$4 sm:$0xff]  }
  0xf3   :  { %2116 = vmatpush2.bf16.msra.mxu0 %v3288_v14  ;;  %v3338_v14 = vld [vmem:[%s4465_s1 + $0x8f4] ss:$8 sps:$4 sm:$0xff]  }
  0xf4   :  { %2117 = vmatprep.subr.bf16.mxu0 %v3296_v15  ;;  %v3336_v15 = vld [vmem:[%s4465_s1 + $0x8f0] ss:$8 sps:$4 sm:$0xff]  }
  0xf5   :  { %2157 = vmatpush2.bf16.msra.mxu1 %v3291_v16  ;;  %v3341_v16 = vld [vmem:[%s4465_s1 + $0x8e4] ss:$8 sps:$4 sm:$0xff]  }
  0xf6   :  { %2158 = vmatprep.subr.bf16.mxu1 %v3299_v17  ;;  %v3339_v17 = vld [vmem:[%s4465_s1 + $0x8e0] ss:$8 sps:$4 sm:$0xff]  }
  0xf7   :  { %2118 = vmatpush2.bf16.msra.mxu0 %v3294_v18  ;;  %v3344_v18 = vld [vmem:[%s4465_s1 + $0x8d4] ss:$8 sps:$4 sm:$0xff]  }
  0xf8   :  { %2119 = vmatprep.subr.bf16.mxu0 %v3302_v20  ;;  %v3347_v20 = vld [vmem:[%s4465_s1 + $0x8c4] ss:$8 sps:$4 sm:$0xff]  }
  0xf9   :  { %2159 = vmatpush2.bf16.msra.mxu1 %v3297_v21  ;;  %v3345_v21 = vld [vmem:[%s4465_s1 + $0x8c0] ss:$8 sps:$4 sm:$0xff]  }
  0xfa   :  { %2160 = vmatprep.subr.bf16.mxu1 %v3305_v22  ;;  %v3350_v22 = vld [vmem:[%s4465_s1 + $0x8b4] ss:$8 sps:$4 sm:$0xff]  }
  0xfb   :  { %2120 = vmatpush2.bf16.msra.mxu0 %v3300_v23  ;;  %v3348_v23 = vld [vmem:[%s4465_s1 + $0x8b0] ss:$8 sps:$4 sm:$0xff]  }
  0xfc   :  { %2121 = vmatprep.subr.bf16.mxu0 %v3308_v25  ;;  %v3354_v25 = vld [vmem:[%s4465_s1 + $0x8a0] ss:$8 sps:$4 sm:$0xff]  }
  0xfd   :  { %2161 = vmatpush2.bf16.msra.mxu1 %v3303_v26  ;;  %v3362_v26 = vld [vmem:[%s4465_s1 + $0x894] ss:$8 sps:$4 sm:$0xff]  }
  0xfe   :  { %2162 = vmatprep.subr.bf16.mxu1 %v3311_v27  ;;  %v3360_v27 = vld [vmem:[%s4465_s1 + $0x890] ss:$8 sps:$4 sm:$0xff]  }
  0xff   :  { %2122 = vmatpush2.bf16.msra.mxu0 %v3306_v28  ;;  %v3368_v28 = vld [vmem:[%s4465_s1 + $0x884] ss:$8 sps:$4 sm:$0xff]  }
 0x100   :  { %2173 = vmatprep.subr.bf16.mxu0 %v3314_v32 }
 0x101   :  { %2163 = vmatpush2.bf16.msra.mxu1 %v3309_v34 }
 0x102   :  { %v1879_v46 = vpop.f32.mrf.mxu0  ;;  %2124 = vmatmul.mubr.bf16.vlgmr.msra.gmra.mxu0 %v58_v37  ;;  %2224 = vmatprep.subr.bf16.mxu1 %v3353_v38 }
 0x103   :  { %v1880_v48 = vadd.f32 %v1879_v46, %v364_v39  ;;  %2174 = vmatpush1.bf16.msra.mxu0 %v3312_v40  ;;  %2205 = vmatprep.mubr.bf16.mxu0 %v63_v41  ;;  %v1920_v51 = vpop.f32.mrf.mxu1  ;;  %v3371_v46 = vld [vmem:[%s4468_s3 + $0x70] sm:$0xff]  }
 0x104   :  { %v1881_v50 = vpop.f32.mrf.mxu0  ;;  %2165 = vmatmul.mubr.bf16.vlgmr.msra.gmra.mxu1 %v60_v42  ;;  %2175 = vmatprep.subr.bf16.mxu0 %v3317_v43  ;;  %v3369_v43 = vld [vmem:[%s4468_s3 + $0x78] sm:$0xff]  }
 0x105   :  { %v1882_v53 = vadd.f32 %v1881_v50, %v368_v44  ;;  %v4282_v54 = vadd.f32 %v1920_v51, %v1880_v48  ;;  %2225 = vmatpush1.bf16.msra.mxu1 %v3351_v45  ;;  %2246 = vmatprep.mubr.bf16.mxu1 %v3393_v56  ;;  %v1922_v58 = vpop.f32.mrf.mxu1  ;;  %v3370_v45 = vld [vmem:[%s4468_s3 + $0x38] sm:$0xff]   ;;  %v3373_v48 = vld [vmem:[%s4468_s3 + $0x68] sm:$0xff]   ;;  %v3375_v50 = vld [vmem:[%s4468_s3 + $0x60] sm:$0xff]  }
 0x106   :  { %v1883_v57 = vpop.f32.mrf.mxu0  ;;  %2226 = vmatprep.subr.bf16.mxu1 %v3359_v47  ;;  %v3372_v47 = vld [vmem:[%s4468_s3 + $0x30] sm:$0xff]   ;;  %v3376_v51 = vld [vmem:[%s4468_s3 + $0x20] sm:$0xff]  }
 0x107   :  { %v4290_v60 = vadd.f32 %v1922_v58, %v1882_v53  ;;  %2176 = vmatpush1.bf16.msra.mxu0 %v3315_v49  ;;  %v1924_v0 = vpop.f32.mrf.mxu1  ;;  %v3374_v49 = vld [vmem:[%s4468_s3 + $0x28] sm:$0xff]   ;;  %v3378_v53 = vld [vmem:[%s4468_s3 + $0x18] sm:$0xff]  }
 0x108   :  { %v1884_v62 = vpop.f32.mrf.mxu0  ;;  %2177 = vmatprep.subr.bf16.mxu0 %v3320_v52  ;;  %v3377_v52 = vld [vmem:[%s4468_s3 + $0x58] sm:$0xff]  }
 0x109   :  { %2227 = vmatpush1.bf16.msra.mxu1 %v3357_v55  ;;  %v1925_v3 = vpop.f32.mrf.mxu1  ;;  %v3380_v55 = vld [vmem:[%s4468_s3 + $0x10] sm:$0xff]  }
 0x10a   :  { %2228 = vmatprep.subr.bf16.mxu1 %v3365_v59 }
 0x10b   :  { %2178 = vmatpush1.bf16.msra.mxu0 %v3318_v61 }
 0x10c   :  { %2179 = vmatprep.subr.bf16.mxu0 %v3323_v63  ;;  %v3382_v63 = vld [vmem:[%s4468_s3 + $0x8] sm:$0xff]  }
 0x10d   :  { %2229 = vmatpush1.bf16.msra.mxu1 %v3363_v1 }
 0x10e   :  { %2874 = vmatprep.subr.bf16.mxu1 %v3369_v43  ;;  %v3391_v43 = vld [vmem:[%s4469_s5 + $0x8] sm:$0xff]  }
 0x10f   :  { %2180 = vmatpush1.bf16.msra.mxu0 %v3321_v4 }
 0x110   :  { %2181 = vmatprep.subr.bf16.mxu0 %v3326_v5  ;;  %2847 = vmatmul.mubr.msk.bf16.vlgmr.msra.gmra.mxu1 %vm1841_vm0, %v64_v6  ;;  %v3383_v5 = vld [vmem:[%s4468_s3 + $0x40] sm:$0xff]  }
 0x111   :  { %2875 = vmatpush3.bf16.msra.mxu1 %v3370_v45  ;;  %v3384_v6 = vld [vmem:[%s4468_s3] sm:$0xff]  }
 0x112   :  { %2876 = vmatprep.subr.bf16.mxu1 %v3371_v46  ;;  %v2848_v46 = vld [vmem:[%s4470_s4] ss:$0 sm:$0xff] }
 0x113   :  { %2182 = vmatpush1.bf16.msra.mxu0 %v3324_v7 }
 0x114   :  { %2183 = vmatprep.subr.bf16.mxu0 %v3329_v8  ;;  %v3394_v8 = vmov 0.0  }
 0x115   :  { %2877 = vmatpush3.bf16.msra.mxu1 %v3372_v47 }
 0x116   :  { %2878 = vmatprep.subr.bf16.mxu1 %v3373_v48 }
 0x117   :  { %2184 = vmatpush1.bf16.msra.mxu0 %v3327_v9 }
 0x118   :  { %2185 = vmatprep.subr.bf16.mxu0 %v3332_v10 }
 0x119   :  { %2879 = vmatpush3.bf16.msra.mxu1 %v3374_v49 }
 0x11a   :  { %2880 = vmatprep.subr.bf16.mxu1 %v3375_v50 }
 0x11b   :  { %2186 = vmatpush1.bf16.msra.mxu0 %v3330_v11 }
 0x11c   :  { %2187 = vmatprep.subr.bf16.mxu0 %v3335_v12 }
 0x11d   :  { %2881 = vmatpush3.bf16.msra.mxu1 %v3376_v51 }
 0x11e   :  { %2882 = vmatprep.subr.bf16.mxu1 %v3377_v52 }
 0x11f   :  { %2188 = vmatpush1.bf16.msra.mxu0 %v3333_v13 }
 0x120   :  { %2189 = vmatprep.subr.bf16.mxu0 %v3338_v14 }
 0x121   :  { %2883 = vmatpush3.bf16.msra.mxu1 %v3378_v53 }
 0x123   :  { %2190 = vmatpush2.bf16.msra.mxu0 %v3336_v15 }
 0x124   :  { %2191 = vmatprep.subr.bf16.mxu0 %v3341_v16 }
 0x127   :  { %2192 = vmatpush2.bf16.msra.mxu0 %v3339_v17 }
 0x128   :  { %2193 = vmatprep.subr.bf16.mxu0 %v3344_v18 }
 0x12b   :  { %2194 = vmatpush2.bf16.msra.mxu0 %v3342_v19 }
 0x12c   :  { %2195 = vmatprep.subr.bf16.mxu0 %v3347_v20 }
 0x12f   :  { %2196 = vmatpush2.bf16.msra.mxu0 %v3345_v21 }
 0x130   :  { %2197 = vmatprep.subr.bf16.mxu0 %v3350_v22 }
 0x133   :  { %2198 = vmatpush2.bf16.msra.mxu0 %v3348_v23 }
 0x134   :  { %2199 = vmatprep.subr.bf16.mxu0 %v3356_v24 }
 0x137   :  { %2200 = vmatpush2.bf16.msra.mxu0 %v3354_v25 }
 0x138   :  { %2201 = vmatprep.subr.bf16.mxu0 %v3362_v26 }
 0x13b   :  { %2202 = vmatpush2.bf16.msra.mxu0 %v3360_v27 }
 0x13c   :  { %2203 = vmatprep.subr.bf16.mxu0 %v3368_v28 }
 0x13f   :  { %2204 = vmatpush2.bf16.msra.mxu0 %v3366_v29 }
 0x142   :  { %v1961_v32 = vpop.f32.mrf.mxu0  ;;  %2206 = vmatmul.mubr.bf16.vlgmr.msra.gmra.mxu0 %v62_v31 }
 0x143   :  { %v1962_v33 = vadd.f32 %v1961_v32, %v4282_v54  ;;  %v2002_v35 = vpop.f32.mrf.mxu1  ;;  %v3379_v54 = vld [vmem:[%s4468_s3 + $0x50] sm:$0xff]  }
 0x144   :  { %v1963_v34 = vpop.f32.mrf.mxu0  ;;  %2884 = vmatprep.subr.bf16.mxu1 %v3379_v54  ;;  %v2865_v54 = vld [vmem:[%s4471_s6] ss:$0 sm:$0xff] }
 0x145   :  { %v1964_v36 = vadd.f32 %v1963_v34, %v4290_v60  ;;  %v2003_v37 = vadd.f32 %v2002_v35, %v1962_v33  ;;  %v2004_v39 = vpop.f32.mrf.mxu1  ;;  %2885 = vmatpush3.bf16.msra.mxu1 %v3380_v55  ;;  %v3381_v60 = vld [vmem:[%s4468_s3 + $0x48] sm:$0xff]  }
 0x146   :  { %v1965_v38 = vpop.f32.mrf.mxu0  ;;  %2886 = vmatprep.subr.bf16.mxu1 %v3381_v60 }
 0x147   :  { %v2005_v40 = vadd.f32 %v2004_v39, %v1964_v36  ;;  %v2006_v42 = vpop.f32.mrf.mxu1  ;;  %v3385_v36 = vld [vmem:[%s4469_s5 + $0x38] sm:$0xff]   ;;  %v3386_v38 = vld [vmem:[%s4469_s5 + $0x30] sm:$0xff]   ;;  %v3387_v39 = vld [vmem:[%s4469_s5 + $0x28] sm:$0xff]  }
 0x148   :  { %v1966_v41 = vpop.f32.mrf.mxu0  ;;  %v3390_v42 = vld [vmem:[%s4469_s5 + $0x10] sm:$0xff]  }
 0x149   :  { %v2007_v44 = vpop.f32.mrf.mxu1  ;;  %2887 = vmatpush3.bf16.msra.mxu1 %v3382_v63  ;;  %v3389_v41 = vld [vmem:[%s4469_s5 + $0x18] sm:$0xff]  }
 0x14a   :  { %2888 = vmatprep.subr.bf16.mxu1 %v3383_v5  ;;  %v3392_v44 = vld [vmem:[%s4469_s5] sm:$0xff]  }
 0x14d   :  { %2889 = vmatpush3.bf16.msra.mxu1 %v3384_v6 }
 0x14e   :  { %2905 = vmatprep.subr.bf16.mxu1 %v3394_v8 }
 0x182   :  { %v2043_v56 = vpop.f32.mrf.mxu0 }
 0x183   :  { %v2044_v57 = vadd.f32 %v2043_v56, %v2003_v37 }
 0x184   :  { %v2045_v58 = vpop.f32.mrf.mxu0  ;;  %v2084_v59 = vpop.f32.mrf.mxu1 }
 0x185   :  { %v2046_v61 = vadd.f32 %v2045_v58, %v2005_v40  ;;  %v2085_v62 = vadd.f32 %v2084_v59, %v2044_v57  ;;  %v3388_v40 = vld [vmem:[%s4469_s5 + $0x20] sm:$0xff]  }
 0x186   :  { %v2047_v0 = vpop.f32.mrf.mxu0  ;;  %v2086_v1 = vpop.f32.mrf.mxu1 }
 0x187   :  { %v2087_v2 = vadd.f32 %v2086_v1, %v2046_v61 }
 0x188   :  { %v2048_v3 = vpop.f32.mrf.mxu0  ;;  %v2088_v4 = vpop.f32.mrf.mxu1 }
 0x18a   :  { %v2089_v7 = vpop.f32.mrf.mxu1 }
 0x1c2   :  { %v2125_v9 = vpop.f32.mrf.mxu0 }
 0x1c3   :  { %v2126_v21 = vadd.f32 %v2125_v9, %v2085_v62 }
 0x1c4   :  { %v2127_v10 = vpop.f32.mrf.mxu0  ;;  %v2166_v11 = vpop.f32.mrf.mxu1 }
 0x1c5   :  { %v2128_v22 = vadd.f32 %v2127_v10, %v2087_v2  ;;  %v2167_v23 = vadd.f32 %v2166_v11, %v2126_v21 }
 0x1c6   :  { %v2129_v12 = vpop.f32.mrf.mxu0  ;;  %v2168_v13 = vpop.f32.mrf.mxu1 }
 0x1c7   :  { %v2169_v25 = vadd.f32 %v2168_v13, %v2128_v22 }
 0x1c8   :  { %v2130_v14 = vpop.f32.mrf.mxu0  ;;  %v2170_v15 = vpop.f32.mrf.mxu1 }
 0x1ca   :  { %v2171_v16 = vpop.f32.mrf.mxu1 }
 0x1d0   :  { %v2248_v17 = vpop.f32.mrf.mxu1 }
 0x1d2   :  { %v2250_v18 = vpop.f32.mrf.mxu1 }
 0x1d4   :  { %v2252_v19 = vpop.f32.mrf.mxu1 }
 0x1d6   :  { %v2253_v20 = vpop.f32.mrf.mxu1 }
 0x202   :  { %v2207_v24 = vpop.f32.mrf.mxu0 }
 0x203   :  { %v2208_v26 = vadd.f32 %v2207_v24, %v2167_v23 }
 0x204   :  { %v2209_v27 = vpop.f32.mrf.mxu0 }
 0x205   :  { %v2249_v28 = vadd.f32 %v2248_v17, %v2208_v26  ;;  %v2210_v29 = vadd.f32 %v2209_v27, %v2169_v25 }
 0x206   :  { %v2211_v30 = vpop.f32.mrf.mxu0 }
 0x207   :  { %v2251_v31 = vadd.f32 %v2250_v18, %v2210_v29  ;;  %v2255_v32 = vmax.f32 %v2249_v28, 0.0 }
 0x208   :  { %v2212_v33 = vpop.f32.mrf.mxu0 }
 0x209   :  { %v2256_v34 = vmax.f32 %v2251_v31, 0.0  ;;  %v2257_v37 = vpack.c.bf16 %v2255_v32, %v2255_v32 }
 0x20b   :  { %v2258_v35 = vpack.c.bf16 %v2256_v34, %v2256_v34 }
 0x20d   :  { %2426 = vmatprep.mubr.bf16.mxu1 %v2258_v35 }
 0x20e   :  { %2427 = vmatmul.mubr.bf16.vlgmr.msra.gmra.mxu1 %v2257_v37 }
 0x20f   :  { %2906 = vmatpush3.bf16.msra.mxu1 %v3385_v36  ;;  %2921 = vmatprep.mubr.msk.bf16.mxu1 %vm3395_vm1, %v3394_v8 }
 0x210   :  { %2907 = vmatprep.subr.bf16.mxu1 %v3394_v8 }
 0x213   :  { %2908 = vmatpush3.bf16.msra.mxu1 %v3386_v38 }
 0x214   :  { %2909 = vmatprep.subr.bf16.mxu1 %v3394_v8 }
 0x217   :  { %2910 = vmatpush3.bf16.msra.mxu1 %v3387_v39 }
 0x218   :  { %2911 = vmatprep.subr.bf16.mxu1 %v3394_v8 }
 0x21b   :  { %2912 = vmatpush3.bf16.msra.mxu1 %v3388_v40 }
 0x21c   :  { %2913 = vmatprep.subr.bf16.mxu1 %v3394_v8 }
 0x21f   :  { %2914 = vmatpush3.bf16.msra.mxu1 %v3389_v41 }
 0x220   :  { %2915 = vmatprep.subr.bf16.mxu1 %v3394_v8 }
 0x223   :  { %2916 = vmatpush3.bf16.msra.mxu1 %v3390_v42 }
 0x224   :  { %2917 = vmatprep.subr.bf16.mxu1 %v3394_v8 }
 0x227   :  { %2918 = vmatpush3.bf16.msra.mxu1 %v3391_v43 }
 0x228   :  { %2919 = vmatprep.subr.bf16.mxu1 %v3394_v8 }
 0x22b   :  { %2920 = vmatpush3.bf16.msra.mxu1 %v3392_v44 }
 0x2ce   :  { %v2890_v45 = vpop.f32.mrf.mxu1 }
 0x2d0   :  { %v2891_v47 = vpop.f32.mrf.mxu1 }
 0x2d1   :  { %v2892_v48 = vadd.f32 %v2891_v47, %v2890_v45 }
 0x2d2   :  { %v2893_v49 = vpop.f32.mrf.mxu1 }
 0x2d3   :  { %v2429_v50 = vadd.f32 %v2892_v48, %v2848_v46 }
 0x2d4   :  { %v2894_v51 = vpop.f32.mrf.mxu1 }
 0x2d5   :  { %v2434_v52 = vmax.f32 %v2429_v50, 0.0 }
 0x2d7   :  { %v2435_v53 = vpack.c.bf16 %v2434_v52, %v2434_v52 }
 0x2d9   :  { %2922 = vmatmul.mubr.bf16.vlgmr.msra.gmra.mxu1 %v2435_v53 }
 0x399   :  { %v2541_v55 = vpop.f32.mrf.mxu1 }
 0x39a   :  { %v2542_v56 = vadd.f32 %v2865_v54, %v2541_v55 }
 0x39b   :  { %v2923_v57 = vpop.f32.mrf.mxu1 }
 0x39c   :  { %v2547_v58 = vpack.c.bf16 %v2542_v56, %v2542_v56 }
 0x39d   :  { %v2544_v59 = vpop.f32.mrf.mxu1 }
 0x39e   :  { %2548 = vst [vmem:[%s4472_s7] sm:$0xf] %v2547_v58 }
 0x39f   :  { %v2924_v60 = vpop.f32.mrf.mxu1 }

</bundles_post_ra>
